<compile_context>
chip_gen: v6e
topology: v6e:2x2x1
jax: 0.10.0
libtpu: 0.0.40
codegen_flags: <defaults>
</compile_context>

<pallas_src>
import jax
import jax.numpy as jnp
from jax.experimental import pallas as pl
from jax.experimental.pallas import tpu as pltpu


def _ape_kernel(x_ref, freq_ref, shift_ref, o_ref):
    # x_ref:     (TM, Fin)
    # freq_ref:  (TM, NF)
    # shift_ref: (TM, NF)
    # o_ref:     (TM, 2*NF*Fin)
    x = x_ref[...]
    fr = freq_ref[...]
    sh = shift_ref[...]

    tm, fin = x.shape
    nf = fr.shape[-1]
    w = nf * fin

    # Build lane-dense (TM, NF*Fin) operands once per tile, then do the FMA and
    # the sin/cos transcendentals at full 128-lane width.  Flattened column
    # j = k*Fin + f (freq index k slower), matching torch's row-major reshape.
    x_t = jnp.broadcast_to(x[:, None, :], (tm, nf, fin)).reshape(tm, w)    # j -> x[:, j % Fin]
    fr_r = jnp.broadcast_to(fr[:, :, None], (tm, nf, fin)).reshape(tm, w)  # j -> fr[:, j // Fin]
    sh_r = jnp.broadcast_to(sh[:, :, None], (tm, nf, fin)).reshape(tm, w)

    x_proj = x_t * fr_r + sh_r

    # Write sin/cos straight into the output halves (no concatenate temporary).
    o_ref[:, :w] = jnp.sin(x_proj)
    o_ref[:, w:] = jnp.cos(x_proj)


def _round_up(a, b):
    return (a + b - 1) // b * b


def adaptive_positional_encoding(x, freq, shift, *, row_tile=1024):
    """x: (R, S, Fin), freq/shift: (R, S, NF) -> (R, S, 2*NF*Fin)."""
    R, S, Fin = x.shape
    NF = freq.shape[-1]
    M = R * S
    W = NF * Fin
    out_w = 2 * W

    x2 = x.reshape(M, Fin)
    f2 = freq.reshape(M, NF)
    s2 = shift.reshape(M, NF)

    # Row tile: big enough to amortize per-grid-step overhead (~0.35 us) and
    # give the auto-pipeliner real DMA to overlap; small enough that the
    # double-buffered tiles stay ~1-2 MiB of VMEM (safe on v5e/v6e/v7x).
    TM = min(row_tile, _round_up(M, 8))
    M_pad = _round_up(M, TM)
    if M_pad != M:
        pad = M_pad - M
        x2 = jnp.pad(x2, ((0, pad), (0, 0)))
        f2 = jnp.pad(f2, ((0, pad), (0, 0)))
        s2 = jnp.pad(s2, ((0, pad), (0, 0)))

    grid = (M_pad // TM,)

    itemsize = jnp.dtype(x.dtype).itemsize
    cost = pl.CostEstimate(
        flops=2 * M * W,                # one FMA per projected element
        transcendentals=2 * M * W,      # one sin + one cos per element
        bytes_accessed=(M * (Fin + 2 * NF) + M * out_w) * itemsize,
    )

    # NOTE: for problem sizes where NF*Fin is not a multiple of 128, the two
    # half-stores are partially masked; padding the lane dim in the wrapper is
    # possible but costs an extra XLA copy, so it is not done here.
    out2 = pl.pallas_call(
        _ape_kernel,
        out_shape=jax.ShapeDtypeStruct((M_pad, out_w), x.dtype),
        grid_spec=pltpu.PrefetchScalarGridSpec(
            num_scalar_prefetch=0,
            grid=grid,
            in_specs=[
                pl.BlockSpec((TM, Fin), lambda i: (i, 0)),
                pl.BlockSpec((TM, NF), lambda i: (i, 0)),
                pl.BlockSpec((TM, NF), lambda i: (i, 0)),
            ],
            out_specs=pl.BlockSpec((TM, out_w), lambda i: (i, 0)),
        ),
        compiler_params=pltpu.CompilerParams(
            dimension_semantics=("parallel",),
        ),
        cost_estimate=cost,
    )(x2, f2, s2)

    if M_pad != M:
        out2 = out2[:M]
    return out2.reshape(R, S, out_w)


def _reference(x, freq, shift):
    # Pure-JAX reference mirroring the torch code.
    x_proj = x[..., None, :] * freq[..., :, None] + shift[..., :, None]
    x_proj = x_proj.reshape(*x.shape[:-1], -1)
    return jnp.concatenate([jnp.sin(x_proj), jnp.cos(x_proj)], axis=-1)


if __name__ == "__main__":
    key = jax.random.PRNGKey(0)
    k1, k2, k3 = jax.random.split(key, 3)

    num_rays, num_samples, in_features, num_freqs = 2, 8, 4, 16

    x = jax.random.normal(k1, (num_rays, num_samples, in_features), jnp.float32)
    # deterministic "adaptive" frequencies/shifts (synthetic; no checkpoint load)
    base = 2.0 ** jnp.linspace(0.0, 4.0, num_freqs, dtype=jnp.float32)
    freq = base[None, None, :] * (
        1.0 + 0.1 * jax.random.normal(k2, (num_rays, num_samples, num_freqs), jnp.float32)
    )
    shift = 0.1 * jax.random.normal(k3, (num_rays, num_samples, num_freqs), jnp.float32)

    out = adaptive_positional_encoding(x, freq, shift)
    out = jax.block_until_ready(out)

    ref = _reference(x, freq, shift)
    assert out.shape == (num_rays, num_samples, 2 * num_freqs * in_features)
    assert jnp.allclose(out, ref, atol=1e-5, rtol=1e-5)

    print("KERNEL_OK")
</pallas_src>

<mosaic_0001>
module attributes {stable_mosaic.version = 11 : i64} {
  func.func @_ape_kernel(%arg0: i32, %arg1: memref<16x4xf32, #tpu.memory_space<vmem>>, %arg2: memref<16x16xf32, #tpu.memory_space<vmem>>, %arg3: memref<16x16xf32, #tpu.memory_space<vmem>>, %arg4: memref<16x128xf32, #tpu.memory_space<vmem>>) attributes {dimension_semantics = [#tpu.dimension_semantics<parallel>], iteration_bounds = array<i64: 1>, scalar_prefetch = 0 : i64, scratch_operands = 0 : i64, tpu.core_type = #tpu.core_type<tc>, window_params = [{transform_indices = @transform_0, window_bounds = array<i64: 16, 4>}, {transform_indices = @transform_1, window_bounds = array<i64: 16, 16>}, {transform_indices = @transform_2, window_bounds = array<i64: 16, 16>}, {transform_indices = @transform_3, window_bounds = array<i64: 16, 128>}]} {
    %c0 = arith.constant 0 : index
    %c0_0 = arith.constant 0 : index
    %0 = vector.load %arg1[%c0, %c0_0] : memref<16x4xf32, #tpu.memory_space<vmem>>, vector<16x4xf32>
    %c0_1 = arith.constant 0 : index
    %c0_2 = arith.constant 0 : index
    %1 = vector.load %arg2[%c0_1, %c0_2] : memref<16x16xf32, #tpu.memory_space<vmem>>, vector<16x16xf32>
    %c0_3 = arith.constant 0 : index
    %c0_4 = arith.constant 0 : index
    %2 = vector.load %arg3[%c0_3, %c0_4] : memref<16x16xf32, #tpu.memory_space<vmem>>, vector<16x16xf32>
    %3 = vector.shape_cast %0 : vector<16x4xf32> to vector<16x1x4xf32>
    %4 = vector.shape_cast %3 : vector<16x1x4xf32> to vector<16x1x4xf32>
    %5 = vector.broadcast %4 : vector<16x1x4xf32> to vector<16x16x4xf32>
    %6 = vector.shape_cast %5 : vector<16x16x4xf32> to vector<16x64xf32>
    %7 = vector.shape_cast %1 : vector<16x16xf32> to vector<16x16x1xf32>
    %8 = vector.shape_cast %7 : vector<16x16x1xf32> to vector<16x16x1xf32>
    %9 = vector.broadcast %8 : vector<16x16x1xf32> to vector<16x16x4xf32>
    %10 = vector.shape_cast %9 : vector<16x16x4xf32> to vector<16x64xf32>
    %11 = vector.shape_cast %2 : vector<16x16xf32> to vector<16x16x1xf32>
    %12 = vector.shape_cast %11 : vector<16x16x1xf32> to vector<16x16x1xf32>
    %13 = vector.broadcast %12 : vector<16x16x1xf32> to vector<16x16x4xf32>
    %14 = vector.shape_cast %13 : vector<16x16x4xf32> to vector<16x64xf32>
    %15 = arith.mulf %6, %10 : vector<16x64xf32>
    %16 = arith.addf %15, %14 : vector<16x64xf32>
    %17 = math.sin %16 : vector<16x64xf32>
    %c0_5 = arith.constant 0 : index
    %c0_6 = arith.constant 0 : index
    %18 = vector.load %arg4[%c0_5, %c0_6] : memref<16x128xf32, #tpu.memory_space<vmem>>, vector<16x64xf32>
    tpu.vector_store %arg4[%c0_5, %c0_6], %17 {strides = array<i32>} : memref<16x128xf32, #tpu.memory_space<vmem>>, vector<16x64xf32>,
    %19 = math.cos %16 : vector<16x64xf32>
    %c0_7 = arith.constant 0 : index
    %c64 = arith.constant 64 : index
    %20 = vector.load %arg4[%c0_7, %c64] : memref<16x128xf32, #tpu.memory_space<vmem>>, vector<16x64xf32>
    tpu.vector_store %arg4[%c0_7, %c64], %19 {strides = array<i32>} : memref<16x128xf32, #tpu.memory_space<vmem>>, vector<16x64xf32>,
    return
  }
  func.func @transform_0(%arg0: i32) -> (i32, i32) {
    %c0_i32 = arith.constant 0 : i32
    %c0_i32_0 = arith.constant 0 : i32
    return %arg0, %c0_i32 : i32, i32
  }
  func.func @transform_1(%arg0: i32) -> (i32, i32) {
    %c0_i32 = arith.constant 0 : i32
    %c0_i32_0 = arith.constant 0 : i32
    return %arg0, %c0_i32 : i32, i32
  }
  func.func @transform_2(%arg0: i32) -> (i32, i32) {
    %c0_i32 = arith.constant 0 : i32
    %c0_i32_0 = arith.constant 0 : i32
    return %arg0, %c0_i32 : i32, i32
  }
  func.func @transform_3(%arg0: i32) -> (i32, i32) {
    %c0_i32 = arith.constant 0 : i32
    %c0_i32_0 = arith.constant 0 : i32
    return %arg0, %c0_i32 : i32, i32
  }
}

</mosaic_0001>

<bundles_post_ra>
// kernel: tpu_custom_call.1
= control target key start
LH: loop header
LB: loop body
LE: loop exit
PB: predicated region body
PF: predicated region fallthrough
CT: control target
= control target key end

     0   :  { %8 = vsyncpa [#allocation3], 0  ;;  %s4193_s0 = inlined_call_operand.vmem [shape: f32[16,4], index: 0, kind: input, shape index: {}]   ;;  %s4194_s1 = inlined_call_operand.vmem [shape: f32[16,16], index: 1, kind: input, shape index: {}]   ;;  %s4195_s2 = inlined_call_operand.hbm [shape: f32[16,16], index: 2, kind: input, shape index: {}]   ;;  %s4196_s3 = inlined_call_operand.hbm [shape: f32[16,128], index: 3, kind: output, shape index: {}]  }
   0x1   :  { %9 = vsyncpa [#allocation4], 0  ;;  %s2933_s12 = smov [#allocation2]  }
   0x2   :  { %s19_s13 = sshll.u32 %s2933_s12, 4  ;;  %s20_s13 = int_to_ptr.vmem [resolvable:$true] %s19_s13 }
   0x3   :  { %s2897_s14 = scalar_lea.vmem %s20_s13, 256  ;;  %p2902_p1 = scmp.lt.s32.totalorder %s20_s13, %s20_s13 }
   0x4   :  { %p2898_p0 = scmp.ne.s32.totalorder %s20_s13, %s2897_s14  ;;  %p2903_p2 = scmp.lt.s32.totalorder %s2897_s14, %s2897_s14 }
   0x6   :  { %p2904_p3 = por %p2903_p2, %p2902_p1 }
   0x8   :  { %p2905_p4 = pnand %p2904_p3, %p2898_p0 }
   0xa   :  { %2908 = shalt.err (!%p2905_p4)
}
   0xb   :  { %s2934_s15 = smov 128   ;;  %s2935_s16 = smov 8  }
   0xc   :  { %25 = dma.hbm_to_vmem [thread:$0]  %s4195_s2, 256, %s20_s13, [#allocation3], %s2934_s15, %s2934_s15, %s2935_s16  }
   0xd   :  { %2929 = dma.done.wait [#allocation3], 256  }
   0xe   :  { %2930 = vsyncadd [#allocation3], 4294967040  ;;  %v41_v0 = vlaneseq  ;;  %v2936_v2 = vmov 1983009808   ;;  %v2937_v4 = vmov 1966171168  }
   0xf   :  { %v218_v3 = vunpack.c.l.s4 %v2936_v2  ;;  %v39_v5 = vunpack.c.l.s4 %v2937_v4  ;;  %v2938_v6 = vmov 1934713408   ;;  %v3002_v14 = vld [vmem:[%s4194_s1] sm:$0xff]  ;;  %v30_v16 = vld [vmem:[%s4193_s0 + $0x8] sm:$0xff]  ;;  %s2940_s24 = smov 12   ;;  %s2941_s25 = smov 16  }
  0x10   :  { %v2987_v1 = vshrl.u32 %v41_v0, 7  ;;  %v282_v7 = vunpack.c.l.s4 %v2938_v6  ;;  %v29_v15 = vld [vmem:[%s4193_s0] sm:$0xff]  ;;  %v86_v22 = vcombine.high %v30_v16, %v30_v16  ;;  %s2939_s0 = smov 4   ;;  %s2942_s26 = smov 20   ;;  %vm593_vm0 = vcmask 31744  }
  0x11   :  { %v40_v9 = vunpack.c.0.s8 %v39_v5  ;;  %v219_v11 = vunpack.c.0.s8 %v218_v3  ;;  %v37_v20 = vcombine.high %v29_v15, %v29_v15  ;;  %s2943_s27 = smov 24   ;;  %s2944_s28 = smov 28   ;;  %vm596_vm1 = vcmask 64512  }
  0x12   :  { %v2990_v8 = vsub.s32 1, %v2987_v1  ;;  %v2993_v10 = vsub.s32 0, %v2987_v1  ;;  %v2996_v12 = vsub.s32 2, %v2987_v1  ;;  %v283_v17 = vunpack.c.0.s8 %v282_v7  ;;  %s2946_s4 = smov 36   ;;  %s2947_s5 = smov 40  }
  0x13   :  { %v43_v13 = vsub.s32 %v40_v9, %v2987_v1  ;;  %v3019_v24 = vsub.s32 %v219_v11, %v2987_v1  ;;  %s2948_s6 = smov 44   ;;  %vm599_vm2 = vcmask 97280   ;;  %s2949_s7 = smov 48   ;;  %vm602_vm3 = vcmask 130048  }
  0x14   :  { %v3012_v18 = vrot.slane %v3002_v14, %v2993_v10  ;;  %v3016_v19 = vrot.slane %v3002_v14, %v2990_v8  ;;  %v3025_v25 = vrot.slane %v3002_v14, %v2996_v12  ;;  %v3028_v31 = vsub.s32 %v283_v17, %v2987_v1  ;;  %s2950_s8 = smov 52   ;;  %s2951_s9 = smov 56  }
  0x15   :  { %v44_v21 = vrot.slane %v29_v15, %v43_v13  ;;  %v93_v23 = vrot.slane %v30_v16, %v43_v13  ;;  %v51_v26 = vrot.slane %v37_v20, %v43_v13  ;;  %v100_v29 = vrot.slane %v86_v22, %v43_v13  ;;  %s2952_s10 = smov 60   ;;  %s2959_s11 = smov 64  }
  0x16   :  { %643 = vbcast.lane.b32.xlu1 %v3012_v18, 256  ;;  %654 = vbcast.lane.b32.xlu0 %v3016_v19, 256  ;;  %vm605_vm4 = vcmask 162816   ;;  %vm608_vm5 = vcmask 195584   ;;  %vm611_vm6 = vcmask 228352   ;;  %vm614_vm7 = vcmask 261120  }
  0x17   :  { %v52_v27 = vcombine.high %v44_v21, %v44_v21  ;;  %v60_v28 = vrot.slane %v44_v21, %v43_v13  ;;  %v101_v30 = vcombine.high %v93_v23, %v93_v23  ;;  %v53_v32 = vcombine.high %v51_v26, %v51_v26  ;;  %s2960_s12 = smov [#allocation5]  }
  0x18   :  { %v67_v33 = vrot.slane %v51_v26, %v43_v13  ;;  %v109_v34 = vrot.slane %v93_v23, %v43_v13  ;;  %v102_v38 = vcombine.high %v100_v29, %v100_v29  ;;  %v116_v42 = vrot.slane %v100_v29, %v43_v13  ;;  %s2815_s13 = sshll.u32 %s2960_s12, 4  ;;  %s2816_s13 = int_to_ptr.vmem [resolvable:$true] %s2815_s13 }
  0x19   :  { %v74_v35 = vrot.slane %v52_v27, %v43_v13  ;;  %v82_v36 = vcombine.high %v60_v28, %v60_v28  ;;  %v3031_v37 = vrot.slane %v60_v28, %v2993_v10  ;;  %v81_v39 = vrot.slane %v53_v32, %v43_v13  ;;  %s2909_s14 = scalar_lea.vmem %s2816_s13, 256  ;;  %p2914_p6 = scmp.lt.s32.totalorder %s2816_s13, %s2816_s13 }
  0x1a   :  { %665 = vbcast.lane.b32.xlu1 %v3025_v25, 256  ;;  %v83_v40 = vcombine.high %v67_v33, %v67_v33  ;;  %v3035_v41 = vrot.slane %v67_v33, %v2993_v10  ;;  %v123_v46 = vrot.slane %v101_v30, %v43_v13  ;;  %v130_v50 = vrot.slane %v102_v38, %v43_v13  ;;  %p2910_p5 = scmp.ne.s32.totalorder %s2816_s13, %s2909_s14  ;;  %p2915_p7 = scmp.lt.s32.totalorder %s2909_s14, %s2909_s14 }
  0x1b   :  { %v84_v43 = vcombine.high %v74_v35, %v74_v35  ;;  %v3038_v44 = vrot.slane %v74_v35, %v2993_v10  ;;  %v3041_v45 = vrot.slane %v82_v36, %v2993_v10  ;;  %v85_v47 = vcombine.high %v81_v39, %v81_v39 }
  0x1c   :  { %v3044_v48 = vrot.slane %v81_v39, %v2993_v10  ;;  %v3047_v49 = vrot.slane %v83_v40, %v2993_v10  ;;  %v131_v53 = vcombine.high %v109_v34, %v109_v34  ;;  %v132_v54 = vcombine.high %v116_v42, %v116_v42  ;;  %p2916_p8 = por %p2915_p7, %p2914_p6 }
  0x1d   :  { %v3050_v51 = vrot.slane %v84_v43, %v2993_v10  ;;  %v215_v52 = vcombine.low %v3031_v37, %v3041_v45  ;;  %v3055_v55 = vrot.slane %v85_v47, %v2993_v10  ;;  %v133_v57 = vcombine.high %v123_v46, %v123_v46 }
  0x1e   :  { %v247_v56 = vcombine.low %v3035_v41, %v3047_v49  ;;  %v134_v58 = vcombine.high %v130_v50, %v130_v50  ;;  %v170_v61 = vrot.slane %v109_v34, %v2993_v10  ;;  %v174_v62 = vrot.slane %v123_v46, %v2993_v10  ;;  %p2917_p9 = pnand %p2916_p8, %p2910_p5 }
  0x1f   :  { %v223_v59 = vrot.slane %v215_v52, %v3019_v24  ;;  %v231_v60 = vcombine.low %v3038_v44, %v3050_v51  ;;  %v263_v0 = vcombine.low %v3044_v48, %v3055_v55  ;;  %v178_v2 = vrot.slane %v131_v53, %v2993_v10 }
  0x20   :  { %v255_v63 = vrot.slane %v247_v56, %v3019_v24  ;;  %v182_v3 = vrot.slane %v133_v57, %v2993_v10  ;;  %v186_v5 = vrot.slane %v116_v42, %v2993_v10  ;;  %v190_v6 = vrot.slane %v130_v50, %v2993_v10 }
  0x21   :  { %v239_v4 = vrot.slane %v231_v60, %v3019_v24  ;;  %v194_v7 = vrot.slane %v132_v54, %v2993_v10  ;;  %v271_v9 = vrot.slane %v263_v0, %v3019_v24  ;;  %v198_v11 = vrot.slane %v134_v58, %v2993_v10 }
  0x22   :  { %v351_v13 = vcombine.low %v170_v61, %v178_v2  ;;  %v367_v15 = vcombine.low %v174_v62, %v182_v3  ;;  %v352_v21 = vcombine.high %v170_v61, %v178_v2  ;;  %v368_v40 = vcombine.high %v174_v62, %v182_v3 }
  0x23   :  { %v280_v16 = vcombine.high %v223_v59, %v239_v4  ;;  %v279_v17 = vcombine.low %v223_v59, %v239_v4  ;;  %v383_v20 = vcombine.low %v186_v5, %v194_v7  ;;  %v312_v22 = vcombine.high %v255_v63, %v271_v9 }
  0x24   :  { %v311_v23 = vcombine.low %v255_v63, %v271_v9  ;;  %v359_v26 = vrot.slane %v351_v13, %v3019_v24  ;;  %v375_v27 = vrot.slane %v367_v15, %v3019_v24  ;;  %v399_v32 = vcombine.low %v190_v6, %v198_v11 }
  0x25   :  { %v294_v28 = vrot.slane %v280_v16, %v3028_v31  ;;  %v3079_v29 = vrot.slane %v279_v17, %v3028_v31  ;;  %v391_v30 = vrot.slane %v383_v20, %v3019_v24  ;;  %v326_v33 = vrot.slane %v312_v22, %v3028_v31 }
  0x26   :  { %v3084_v34 = vrot.slane %v311_v23, %v3028_v31  ;;  %v416_v35 = vcombine.high %v359_v26, %v375_v27  ;;  %v415_v36 = vcombine.low %v359_v26, %v375_v27  ;;  %v407_v38 = vrot.slane %v399_v32, %v3019_v24 }
  0x27   :  { %v366_v39 = vrot.slane %v352_v21, %v3019_v24  ;;  %v384_v42 = vcombine.high %v186_v5, %v194_v7  ;;  %v3088_v43 = vcombine.low %v294_v28, %v326_v33  ;;  %v382_v54 = vrot.slane %v368_v40, %v3019_v24 }
  0x28   :  { %v3092_v46 = vcombine.high %v3079_v29, %v3084_v34  ;;  %v430_v47 = vrot.slane %v416_v35, %v3028_v31  ;;  %v448_v50 = vcombine.high %v391_v30, %v407_v38  ;;  %v423_v52 = vrot.slane %v415_v36, %v3028_v31 }
  0x29   :  { %v447_v53 = vcombine.low %v391_v30, %v407_v38  ;;  %497 = vrot.lane.b32.xlu1 %v3088_v43, %s2935_s16  ;;  %v398_v56 = vrot.slane %v384_v42, %v3019_v24  ;;  %v400_v57 = vcombine.high %v190_v6, %v198_v11  ;;  %v216_v58 = vcombine.high %v3031_v37, %v3041_v45 }
  0x2a   :  { %489 = vrot.lane.b32.xlu0 %v3092_v46, %s2939_s0  ;;  %v462_v59 = vrot.slane %v448_v50, %v3028_v31  ;;  %v431_v61 = vcombine.low %v366_v39, %v382_v54  ;;  %v232_v62 = vcombine.high %v3038_v44, %v3050_v51  ;;  %v248_v2 = vcombine.high %v3035_v41, %v3047_v49 }
  0x2b   :  { %v455_v60 = vrot.slane %v447_v53, %v3028_v31  ;;  %v414_v63 = vrot.slane %v400_v57, %v3019_v24  ;;  %v230_v0 = vrot.slane %v216_v58, %v3019_v24  ;;  %v264_v3 = vcombine.high %v3044_v48, %v3055_v55 }
  0x2c   :  { %v3114_v4 = vcombine.low %v430_v47, %v462_v59  ;;  %v246_v5 = vrot.slane %v232_v62, %v3019_v24  ;;  %v262_v6 = vrot.slane %v248_v2, %v3019_v24  ;;  %v3125_v41 = vcombine.high %v430_v47, %v462_v59 }
  0x2d   :  { %v3116_v37 = vcombine.high %v423_v52, %v455_v60  ;;  %v463_v45 = vcombine.low %v398_v56, %v414_v63  ;;  %v278_v44 = vrot.slane %v264_v3, %v3019_v24  ;;  %v3127_v48 = vcombine.high %v294_v28, %v326_v33 }
  0x2e   :  { %499 = vrot.lane.b32.xlu1 %v3114_v4, %s2935_s16  ;;  %v439_v49 = vrot.slane %v431_v61, %v3028_v31  ;;  %v295_v55 = vcombine.low %v230_v0, %v246_v5  ;;  %v432_v13 = vcombine.high %v366_v39, %v382_v54  ;;  %v464_v15 = vcombine.high %v398_v56, %v414_v63  ;;  %v33_v63 = vld [vmem:[#allocation2] sm:$0xff] }
  0x2f   :  { %491 = vrot.lane.b32.xlu0 %v3116_v37, %s2939_s0  ;;  %4215 = vst [vmem:[#allocation8_spill] sm:$0xff] %v3127_v48  ;;  %v471_v51 = vrot.slane %v463_v45, %v3028_v31  ;;  %v327_v7 = vcombine.low %v262_v6, %v278_v44  ;;  %v296_v17 = vcombine.high %v230_v0, %v246_v5  ;;  %v3168_v35 = vsub.s32 4, %v2987_v1 }
  0x30   :  { %v303_v9 = vrot.slane %v295_v55, %v3028_v31  ;;  %v328_v20 = vcombine.high %v262_v6, %v278_v44  ;;  %v3144_v23 = vrot.slane %v432_v13, %v3028_v31  ;;  %v3147_v26 = vrot.slane %v464_v15, %v3028_v31  ;;  %v34_v44 = vld [vmem:[#allocation2 + $0x8] sm:$0xff] }
  0x31   :  { %v335_v11 = vrot.slane %v327_v7, %v3028_v31  ;;  %v3137_v16 = vcombine.low %v439_v49, %v471_v51  ;;  %v3141_v22 = vcombine.high %v439_v49, %v471_v51  ;;  %v310_v28 = vrot.slane %v296_v17, %v3028_v31 }
  0x32   :  { %507 = vrot.lane.b32.xlu1 %v3125_v41, %s2940_s24  ;;  %v342_v30 = vrot.slane %v328_v20, %v3028_v31  ;;  %v3159_v32 = vcombine.low %v3144_v23, %v3147_v26  ;;  %v3172_v36 = vcombine.low %v3079_v29, %v3084_v34  ;;  %v3174_v38 = vcombine.low %v423_v52, %v455_v60  ;;  %v32_v52 = vld [vmem:[%s4194_s1 + $0x8] sm:$0xff]  ;;  %s2945_s1 = smov 32  }
  0x33   :  { %505 = vrot.lane.b32.xlu0 %v3127_v48, %s2940_s24  ;;  %4216 = vst [vmem:[#allocation9_spill] sm:$0xff] %v3137_v16  ;;  %v3139_v21 = vcombine.low %v303_v9, %v335_v11  ;;  %4218 = vst [vmem:[#allocation11_spill] sm:$0xff] %v3141_v22  ;;  %v3153_v27 = vcombine.high %v303_v9, %v335_v11  ;;  %v3184_v40 = vrot.slane %v3002_v14, %v3168_v35  ;;  %vm617_vm8 = vcmask 293888  }
  0x34   :  { %4220 = vst [vmem:[#allocation13_spill] sm:$0xff] %v3159_v32  ;;  %v3165_v33 = vcombine.low %v310_v28, %v342_v30  ;;  %4222 = vst [vmem:[#allocation15_spill] sm:$0xff] %v3172_v36  ;;  %v3180_v39 = vcombine.high %v310_v28, %v342_v30  ;;  %v673_v42 = vsub.s32 3, %v2987_v1  ;;  %v706_v29 = vsub.s32 6, %v2987_v1 }
  0x35   :  { %4217 = vst [vmem:[#allocation10_spill] sm:$0xff] %v3139_v21  ;;  %4219 = vst [vmem:[#allocation12_spill] sm:$0xff] %v3153_v27  ;;  %v695_v50 = vsub.s32 5, %v2987_v1  ;;  %v729_v54 = vrot.slane %v32_v52, %v2993_v10  ;;  %v717_v56 = vsub.s32 7, %v2987_v1  ;;  %v751_v58 = vrot.slane %v32_v52, %v2996_v12 }
  0x36   :  { %515 = vrot.lane.b32.xlu1 %v3137_v16, %s2941_s25  ;;  %4221 = vst [vmem:[#allocation14_spill] sm:$0xff] %v3165_v33  ;;  %4223 = vst [vmem:[#allocation16_spill] sm:$0xff] %v3174_v38  ;;  %v3192_v34 = vrot.slane %v3002_v14, %v673_v42  ;;  %v3195_v47 = vrot.slane %v3002_v14, %v706_v29  ;;  %v740_v59 = vrot.slane %v32_v52, %v2990_v8  ;;  %vm620_vm9 = vcmask 326656  }
  0x37   :  { %513 = vrot.lane.b32.xlu0 %v3139_v21, %s2941_s25  ;;  %4224 = vst [vmem:[#allocation17_spill] sm:$0xff] %v3180_v39  ;;  %v696_v53 = vrot.slane %v3002_v14, %v695_v50  ;;  %v718_v57 = vrot.slane %v3002_v14, %v717_v56  ;;  %v773_v60 = vrot.slane %v32_v52, %v3168_v35  ;;  %vm623_vm10 = vcmask 359424  }
  0x38   :  { %v762_v61 = vrot.slane %v32_v52, %v673_v42  ;;  %v795_v62 = vrot.slane %v32_v52, %v706_v29  ;;  %v784_v1 = vrot.slane %v32_v52, %v695_v50  ;;  %v1511_v0 = vrot.slane %v33_v63, %v2993_v10 }
  0x39   :  { %v806_v14 = vrot.slane %v32_v52, %v717_v56  ;;  %v1533_v2 = vrot.slane %v33_v63, %v2996_v12  ;;  %v1522_v3 = vrot.slane %v33_v63, %v2990_v8  ;;  %v1555_v45 = vrot.slane %v33_v63, %v3168_v35 }
  0x3a   :  { %523 = vrot.lane.b32.xlu1 %v3141_v22, %s2942_s26  ;;  %v1544_v5 = vrot.slane %v33_v63, %v673_v42  ;;  %v1577_v6 = vrot.slane %v33_v63, %v706_v29  ;;  %v1566_v49 = vrot.slane %v33_v63, %v695_v50  ;;  %v1599_v51 = vrot.slane %v34_v44, %v2993_v10 }
  0x3b   :  { %521 = vrot.lane.b32.xlu0 %v3153_v27, %s2942_s26  ;;  %v1588_v55 = vrot.slane %v33_v63, %v717_v56  ;;  %v1621_v7 = vrot.slane %v34_v44, %v2996_v12  ;;  %v1610_v9 = vrot.slane %v34_v44, %v2990_v8  ;;  %v1643_v11 = vrot.slane %v34_v44, %v3168_v35 }
  0x3c   :  { %v1632_v13 = vrot.slane %v34_v44, %v673_v42  ;;  %v1665_v15 = vrot.slane %v34_v44, %v706_v29  ;;  %v1654_v17 = vrot.slane %v34_v44, %v695_v50  ;;  %v1676_v10 = vrot.slane %v34_v44, %v717_v56 }
  0x3d   :  { %vm626_vm11 = vcmask 392192   ;;  %vm629_vm12 = vcmask 424960   ;;  %vm632_vm13 = vcmask 457728   ;;  %vm635_vm14 = vcmask 490496  }
  0x3e   :  { %531 = vrot.lane.b32.xlu1 %v3159_v32, %s2943_s27 }
  0x3f   :  { %529 = vrot.lane.b32.xlu0 %v3165_v33, %s2943_s27 }
  0x42   :  { %687 = vbcast.lane.b32.xlu1 %v3184_v40, 256 }
  0x43   :  { %537 = vrot.lane.b32.xlu0 %v3180_v39, %s2944_s28 }
  0x46   :  { %709 = vbcast.lane.b32.xlu1 %v3195_v47, 256 }
  0x47   :  { %676 = vbcast.lane.b32.xlu0 %v3192_v34, 256 }
  0x4a   :  { %731 = vbcast.lane.b32.xlu1 %v729_v54, 256 }
  0x4b   :  { %698 = vbcast.lane.b32.xlu0 %v696_v53, 256 }
  0x4e   :  { %753 = vbcast.lane.b32.xlu1 %v751_v58, 256 }
  0x4f   :  { %720 = vbcast.lane.b32.xlu0 %v718_v57, 256 }
  0x52   :  { %775 = vbcast.lane.b32.xlu1 %v773_v60, 256 }
  0x53   :  { %742 = vbcast.lane.b32.xlu0 %v740_v59, 256 }
  0x56   :  { %797 = vbcast.lane.b32.xlu1 %v795_v62, 256 }
  0x57   :  { %764 = vbcast.lane.b32.xlu0 %v762_v61, 256 }
  0x5a   :  { %1513 = vbcast.lane.b32.xlu1 %v1511_v0, 256 }
  0x5b   :  { %786 = vbcast.lane.b32.xlu0 %v784_v1, 256 }
  0x5e   :  { %1535 = vbcast.lane.b32.xlu1 %v1533_v2, 256 }
  0x5f   :  { %808 = vbcast.lane.b32.xlu0 %v806_v14, 256 }
  0x62   :  { %1557 = vbcast.lane.b32.xlu1 %v1555_v45, 256 }
  0x63   :  { %1524 = vbcast.lane.b32.xlu0 %v1522_v3, 256 }
  0x66   :  { %1579 = vbcast.lane.b32.xlu1 %v1577_v6, 256 }
  0x67   :  { %1546 = vbcast.lane.b32.xlu0 %v1544_v5, 256 }
  0x6a   :  { %1601 = vbcast.lane.b32.xlu1 %v1599_v51, 256 }
  0x6b   :  { %1568 = vbcast.lane.b32.xlu0 %v1566_v49, 256 }
  0x6e   :  { %1623 = vbcast.lane.b32.xlu1 %v1621_v7, 256 }
  0x6f   :  { %1590 = vbcast.lane.b32.xlu0 %v1588_v55, 256 }
  0x72   :  { %1645 = vbcast.lane.b32.xlu1 %v1643_v11, 256 }
  0x73   :  { %1612 = vbcast.lane.b32.xlu0 %v1610_v9, 256 }
  0x76   :  { %1667 = vbcast.lane.b32.xlu1 %v1665_v15, 256 }
  0x77   :  { %1634 = vbcast.lane.b32.xlu0 %v1632_v13, 256 }
  0x7a   :  { %647 = vbcast.lane.b32.xlu1 %v3012_v18, 264 }
  0x7b   :  { %1656 = vbcast.lane.b32.xlu0 %v1654_v17, 256 }
  0x7e   :  { %669 = vbcast.lane.b32.xlu1 %v3025_v25, 264 }
  0x7f   :  { %1678 = vbcast.lane.b32.xlu0 %v1676_v10, 256 }
  0x82   :  { %691 = vbcast.lane.b32.xlu1 %v3184_v40, 264 }
  0x83   :  { %658 = vbcast.lane.b32.xlu0 %v3016_v19, 264 }
  0x86   :  { %713 = vbcast.lane.b32.xlu1 %v3195_v47, 264 }
  0x87   :  { %680 = vbcast.lane.b32.xlu0 %v3192_v34, 264 }
  0x88   :  { %v3224_v8 = vpop.permute.xlu1 %643  ;;  %v3226_v12 = vpop.permute.xlu0 %654 }
  0x8a   :  { %735 = vbcast.lane.b32.xlu1 %v729_v54, 264 }
  0x8b   :  { %702 = vbcast.lane.b32.xlu0 %v696_v53, 264 }
  0x8c   :  { %v3228_v18 = vpop.permute.xlu1 %665 }
  0x8e   :  { %757 = vbcast.lane.b32.xlu1 %v751_v58, 264 }
  0x8f   :  { %724 = vbcast.lane.b32.xlu0 %v718_v57, 264 }
  0x92   :  { %779 = vbcast.lane.b32.xlu1 %v773_v60, 264  ;;  %v814_v60 = vcombine.low %v3224_v8, %v3228_v18 }
  0x93   :  { %746 = vbcast.lane.b32.xlu0 %v740_v59, 264 }
  0x96   :  { %801 = vbcast.lane.b32.xlu1 %v795_v62, 264 }
  0x97   :  { %768 = vbcast.lane.b32.xlu0 %v762_v61, 264 }
  0x9a   :  { %1517 = vbcast.lane.b32.xlu1 %v1511_v0, 264  ;;  %v822_v0 = vrot.slane %v814_v60, %v3019_v24 }
  0x9b   :  { %790 = vbcast.lane.b32.xlu0 %v784_v1, 264  ;;  %v3230_v19 = vpop.permute.xlu1 %497 }
  0x9c   :  { %4225 = vst [vmem:[#allocation18_spill] sm:$0xff] %v3230_v19  ;;  %v3232_v25 = vpop.permute.xlu0 %489 }
  0x9d   :  { %4226 = vst [vmem:[#allocation19_spill] sm:$0xff] %v3232_v25 }
  0x9e   :  { %1539 = vbcast.lane.b32.xlu1 %v1533_v2, 264 }
  0x9f   :  { %812 = vbcast.lane.b32.xlu0 %v806_v14, 264 }
  0xa0   :  { %v3234_v20 = vpop.permute.xlu1 %499 }
  0xa1   :  { %4227 = vst [vmem:[#allocation20_spill] sm:$0xff] %v3234_v20  ;;  %v3236_v28 = vpop.permute.xlu0 %491 }
  0xa2   :  { %4228 = vst [vmem:[#allocation21_spill] sm:$0xff] %v3236_v28  ;;  %1561 = vbcast.lane.b32.xlu1 %v1555_v45, 264 }
  0xa3   :  { %1528 = vbcast.lane.b32.xlu0 %v1522_v3, 264 }
  0xa4   :  { %v3238_v30 = vpop.permute.xlu1 %507 }
  0xa5   :  { %4229 = vst [vmem:[#allocation22_spill] sm:$0xff] %v3238_v30  ;;  %v3240_v35 = vpop.permute.xlu0 %505 }
  0xa6   :  { %4230 = vst [vmem:[#allocation23_spill] sm:$0xff] %v3240_v35  ;;  %1583 = vbcast.lane.b32.xlu1 %v1577_v6, 264 }
  0xa7   :  { %1550 = vbcast.lane.b32.xlu0 %v1544_v5, 264 }
  0xa8   :  { %v3242_v40 = vpop.permute.xlu1 %515 }
  0xa9   :  { %4231 = vst [vmem:[#allocation24_spill] sm:$0xff] %v3242_v40  ;;  %v3244_v42 = vpop.permute.xlu0 %513 }
  0xaa   :  { %4232 = vst [vmem:[#allocation25_spill] sm:$0xff] %v3244_v42  ;;  %1605 = vbcast.lane.b32.xlu1 %v1599_v51, 264 }
  0xab   :  { %1572 = vbcast.lane.b32.xlu0 %v1566_v49, 264 }
  0xac   :  { %v3246_v29 = vpop.permute.xlu1 %523 }
  0xad   :  { %4233 = vst [vmem:[#allocation26_spill] sm:$0xff] %v3246_v29  ;;  %v3248_v34 = vpop.permute.xlu0 %521 }
  0xae   :  { %4234 = vst [vmem:[#allocation27_spill] sm:$0xff] %v3248_v34  ;;  %1627 = vbcast.lane.b32.xlu1 %v1621_v7, 264 }
  0xaf   :  { %1594 = vbcast.lane.b32.xlu0 %v1588_v55, 264 }
  0xb0   :  { %v3250_v47 = vpop.permute.xlu1 %531 }
  0xb1   :  { %4235 = vst [vmem:[#allocation28_spill] sm:$0xff] %v3250_v47  ;;  %v3252_v50 = vpop.permute.xlu0 %529 }
  0xb2   :  { %4236 = vst [vmem:[#allocation29_spill] sm:$0xff] %v3252_v50  ;;  %1649 = vbcast.lane.b32.xlu1 %v1643_v11, 264 }
  0xb3   :  { %1616 = vbcast.lane.b32.xlu0 %v1610_v9, 264 }
  0xb4   :  { %v3256_v53 = vpop.permute.xlu1 %687 }
  0xb5   :  { %v3254_v52 = vpop.permute.xlu0 %537 }
  0xb6   :  { %4237 = vst [vmem:[#allocation30_spill] sm:$0xff] %v3254_v52  ;;  %1671 = vbcast.lane.b32.xlu1 %v1665_v15, 264 }
  0xb7   :  { %1638 = vbcast.lane.b32.xlu0 %v1632_v13, 264 }
  0xb8   :  { %v3260_v56 = vpop.permute.xlu1 %709 }
  0xb9   :  { %v3258_v54 = vpop.permute.xlu0 %676  ;;  %v846_v62 = vcombine.low %v3256_v53, %v3260_v56 }
  0xba   :  { %v830_v57 = vcombine.low %v3226_v12, %v3258_v54  ;;  %v831_v19 = vcombine.high %v3226_v12, %v3258_v54 }
  0xbb   :  { %1660 = vbcast.lane.b32.xlu0 %v1654_v17, 264  ;;  %v854_v3 = vrot.slane %v846_v62, %v3019_v24 }
  0xbc   :  { %v3266_v59 = vpop.permute.xlu1 %731  ;;  %v838_v61 = vrot.slane %v830_v57, %v3019_v24  ;;  %v3377_v54 = vrot.slane %v831_v19, %v3019_v24 }
  0xbd   :  { %v3264_v58 = vpop.permute.xlu0 %698 }
  0xbe   :  { %v878_v2 = vcombine.low %v822_v0, %v838_v61  ;;  %v879_v7 = vcombine.high %v822_v0, %v838_v61 }
  0xbf   :  { %1682 = vbcast.lane.b32.xlu0 %v1676_v10, 264 }
  0xc0   :  { %v3275_v1 = vpop.permute.xlu1 %753  ;;  %v3287_v51 = vrot.slane %v878_v2, %v3028_v31  ;;  %v893_v10 = vrot.slane %v879_v7, %v3028_v31 }
  0xc1   :  { %v3273_v63 = vpop.permute.xlu0 %720  ;;  %v950_v62 = vcombine.low %v3266_v59, %v3275_v1 }
  0xc2   :  { %v862_v14 = vcombine.low %v3264_v58, %v3273_v63 }
  0xc4   :  { %v870_v45 = vrot.slane %v862_v14, %v3019_v24  ;;  %v3284_v6 = vpop.permute.xlu1 %775 }
  0xc5   :  { %v3282_v5 = vpop.permute.xlu0 %742 }
  0xc6   :  { %v910_v44 = vcombine.low %v854_v3, %v870_v45  ;;  %v911_v49 = vcombine.high %v854_v3, %v870_v45 }
  0xc8   :  { %v3290_v55 = vrot.slane %v910_v44, %v3028_v31  ;;  %v3294_v11 = vpop.permute.xlu1 %797  ;;  %v925_v15 = vrot.slane %v911_v49, %v3028_v31  ;;  %v958_v44 = vrot.slane %v950_v62, %v3019_v24 }
  0xc9   :  { %v3292_v9 = vpop.permute.xlu0 %764  ;;  %v982_v2 = vcombine.low %v3284_v6, %v3294_v11 }
  0xca   :  { %v943_v13 = vcombine.high %v3287_v51, %v3290_v55  ;;  %v966_v17 = vcombine.low %v3282_v5, %v3292_v9  ;;  %v944_v0 = vcombine.low %v893_v10, %v925_v15  ;;  %v945_v7 = vcombine.high %v893_v10, %v925_v15 }
  0xcb   :  { %v990_v61 = vrot.slane %v982_v2, %v3019_v24 }
  0xcc   :  { %1360 = vrot.lane.b32.xlu1 %v943_v13, %s2939_s0  ;;  %v3305_v60 = vpop.permute.xlu1 %1513  ;;  %v974_v14 = vrot.slane %v966_v17, %v3019_v24 }
  0xcd   :  { %v3303_v57 = vpop.permute.xlu0 %786 }
  0xce   :  { %v1014_v13 = vcombine.low %v958_v44, %v974_v14  ;;  %v1015_v15 = vcombine.high %v958_v44, %v974_v14  ;;  %v863_v44 = vcombine.high %v3264_v58, %v3273_v63  ;;  %v815_v58 = vcombine.high %v3224_v8, %v3228_v18 }
  0xd0   :  { %1368 = vrot.lane.b32.xlu1 %v944_v0, %s2935_s16  ;;  %v3317_v45 = vpop.permute.xlu1 %1535  ;;  %v3330_v42 = vrot.slane %v1014_v13, %v3028_v31  ;;  %v3371_v47 = vrot.slane %v863_v44, %v3019_v24  ;;  %v3390_v29 = vrot.slane %v815_v58, %v3019_v24 }
  0xd1   :  { %v3315_v3 = vpop.permute.xlu0 %808 }
  0xd2   :  { %v998_v49 = vcombine.low %v3303_v57, %v3315_v3  ;;  %4238 = vst [vmem:[#allocation31_spill] sm:$0xff] %v3330_v42 }
  0xd4   :  { %v1006_v17 = vrot.slane %v998_v49, %v3019_v24  ;;  %1376 = vrot.lane.b32.xlu1 %v945_v7, %s2940_s24  ;;  %v3327_v0 = vpop.permute.xlu1 %1557 }
  0xd5   :  { %v3325_v52 = vpop.permute.xlu0 %1524 }
  0xd6   :  { %v1046_v50 = vcombine.low %v990_v61, %v1006_v17  ;;  %v1047_v34 = vcombine.high %v990_v61, %v1006_v17  ;;  %v1029_v61 = vrot.slane %v1015_v15, %v3028_v31  ;;  %v847_v15 = vcombine.high %v3256_v53, %v3260_v56 }
  0xd8   :  { %v3333_v62 = vrot.slane %v1046_v50, %v3028_v31  ;;  %v3337_v2 = vpop.permute.xlu1 %1579  ;;  %v1061_v7 = vrot.slane %v1047_v34, %v3028_v31  ;;  %v1684_v34 = vcombine.low %v3305_v60, %v3317_v45  ;;  %v3380_v56 = vrot.slane %v847_v15, %v3019_v24 }
  0xd9   :  { %v3335_v10 = vpop.permute.xlu0 %1546  ;;  %v1716_v25 = vcombine.low %v3327_v0, %v3337_v2 }
  0xda   :  { %4239 = vst [vmem:[#allocation32_spill] sm:$0xff] %v3333_v62  ;;  %v1079_v49 = vcombine.high %v3330_v42, %v3333_v62  ;;  %v1700_v35 = vcombine.low %v3325_v52, %v3335_v10  ;;  %v1080_v17 = vcombine.low %v1029_v61, %v1061_v7  ;;  %v1692_v12 = vrot.slane %v1684_v34, %v3019_v24 }
  0xdb   :  { %v1081_v53 = vcombine.high %v1029_v61, %v1061_v7  ;;  %v1724_v18 = vrot.slane %v1716_v25, %v3019_v24  ;;  %v926_v19 = vcombine.low %v3380_v56, %v3371_v47  ;;  %v894_v61 = vcombine.low %v3390_v29, %v3377_v54 }
  0xdc   :  { %1362 = vrot.lane.b32.xlu0 %v1079_v49, %s2939_s0  ;;  %v3348_v50 = vpop.permute.xlu1 %1601  ;;  %v1708_v49 = vrot.slane %v1700_v35, %v3019_v24 }
  0xdd   :  { %v3346_v13 = vpop.permute.xlu0 %1568  ;;  %v934_v40 = vrot.slane %v926_v19, %v3028_v31 }
  0xde   :  { %v1748_v8 = vcombine.low %v1692_v12, %v1708_v49  ;;  %v1749_v28 = vcombine.high %v1692_v12, %v1708_v49  ;;  %v983_v49 = vcombine.high %v3284_v6, %v3294_v11 }
  0xe0   :  { %1370 = vrot.lane.b32.xlu0 %v1080_v17, %s2935_s16  ;;  %v3368_v14 = vpop.permute.xlu1 %1623  ;;  %v3397_v25 = vrot.slane %v1748_v8, %v3028_v31  ;;  %v902_v8 = vrot.slane %v894_v61, %v3028_v31  ;;  %v967_v61 = vcombine.high %v3282_v5, %v3292_v9  ;;  %v1763_v12 = vrot.slane %v1749_v28, %v3028_v31 }
  0xe1   :  { %v3366_v63 = vpop.permute.xlu0 %1590 }
  0xe2   :  { %v1732_v35 = vcombine.low %v3346_v13, %v3366_v63  ;;  %4240 = vst [vmem:[#allocation33_spill] sm:$0xff] %v3397_v25  ;;  %v3450_v28 = vrot.slane %v967_v61, %v3019_v24  ;;  %v927_v61 = vcombine.high %v3380_v56, %v3371_v47  ;;  %v895_v47 = vcombine.high %v3390_v29, %v3377_v54 }
  0xe4   :  { %v1740_v17 = vrot.slane %v1732_v35, %v3019_v24  ;;  %1378 = vrot.lane.b32.xlu0 %v1081_v53, %s2940_s24  ;;  %v3387_v34 = vpop.permute.xlu1 %1645  ;;  %v3502_v54 = vrot.slane %v927_v61, %v3028_v31  ;;  %v3514_v32 = vrot.slane %v895_v47, %v3028_v31 }
  0xe5   :  { %v3385_v44 = vpop.permute.xlu0 %1612 }
  0xe6   :  { %v1780_v7 = vcombine.low %v1724_v18, %v1740_v17  ;;  %v1781_v30 = vcombine.high %v1724_v18, %v1740_v17  ;;  %v1820_v18 = vcombine.low %v3348_v50, %v3368_v14  ;;  %v946_v17 = vcombine.low %v902_v8, %v934_v40 }
  0xe8   :  { %v3400_v15 = vrot.slane %v1780_v7, %v3028_v31  ;;  %v3404_v53 = vpop.permute.xlu1 %1667  ;;  %v999_v7 = vcombine.high %v3303_v57, %v3315_v3  ;;  %v1795_v19 = vrot.slane %v1781_v30, %v3028_v31  ;;  %v1828_v6 = vrot.slane %v1820_v18, %v3019_v24 }
  0xe9   :  { %v3402_v35 = vpop.permute.xlu0 %1634  ;;  %v1852_v3 = vcombine.low %v3387_v34, %v3404_v53 }
  0xea   :  { %4241 = vst [vmem:[#allocation34_spill] sm:$0xff] %v3400_v15  ;;  %v1813_v58 = vcombine.high %v3397_v25, %v3400_v15  ;;  %v1836_v20 = vcombine.low %v3385_v44, %v3402_v35  ;;  %v3438_v30 = vrot.slane %v999_v7, %v3019_v24  ;;  %v1717_v7 = vcombine.high %v3327_v0, %v3337_v2 }
  0xec   :  { %2230 = vrot.lane.b32.xlu1 %v1813_v58, %s2939_s0  ;;  %v3417_v33 = vpop.permute.xlu1 %647  ;;  %v3429_v57 = vrot.slane %v1836_v20, %v3019_v24  ;;  %v951_v58 = vcombine.high %v3266_v59, %v3275_v1  ;;  %v1733_v20 = vcombine.high %v3346_v13, %v3366_v63  ;;  %v3453_v59 = vrot.slane %v983_v49, %v3019_v24 }
  0xed   :  { %v3415_v39 = vpop.permute.xlu0 %1656  ;;  %v1701_v1 = vcombine.high %v3325_v52, %v3335_v10  ;;  %v1860_v63 = vrot.slane %v1852_v3, %v3019_v24  ;;  %v1685_v52 = vcombine.high %v3305_v60, %v3317_v45  ;;  %v3487_v45 = vrot.slane %v1717_v7, %v3019_v24 }
  0xee   :  { %v1884_v13 = vcombine.low %v1828_v6, %v3429_v57  ;;  %v1062_v49 = vcombine.low %v3453_v59, %v3438_v30  ;;  %v3474_v2 = vrot.slane %v951_v58, %v3019_v24  ;;  %v3477_v3 = vrot.slane %v1733_v20, %v3019_v24 }
  0xef   :  { %v3482_v56 = vrot.slane %v1701_v1, %v3019_v24 }
  0xf0   :  { %1384 = vrot.lane.b32.xlu1 %v946_v17, %s2941_s25  ;;  %v3442_v9 = vpop.permute.xlu1 %669  ;;  %v1814_v17 = vcombine.low %v1763_v12, %v1795_v19  ;;  %v1030_v60 = vcombine.low %v3474_v2, %v3450_v28  ;;  %v3491_v58 = vrot.slane %v1884_v13, %v3028_v31  ;;  %v1796_v7 = vcombine.low %v3487_v45, %v3477_v3 }
  0xf1   :  { %v3440_v5 = vpop.permute.xlu0 %1678  ;;  %v1815_v13 = vcombine.high %v1763_v12, %v1795_v19  ;;  %v948_v19 = vcombine.low %v3514_v32, %v3502_v54  ;;  %v1797_v16 = vcombine.high %v3487_v45, %v3477_v3 }
  0xf2   :  { %v1868_v11 = vcombine.low %v3415_v39, %v3440_v5  ;;  %4243 = vst [vmem:[#allocation36_spill] sm:$0xff] %v3491_v58  ;;  %v1038_v61 = vrot.slane %v1030_v60, %v3028_v31  ;;  %v3529_v47 = vrot.slane %v1796_v7, %v3028_v31 }
  0xf3   :  { %v1811_v45 = vrot.slane %v1797_v16, %v3028_v31 }
  0xf4   :  { %v1876_v18 = vrot.slane %v1868_v11, %v3019_v24  ;;  %2238 = vrot.lane.b32.xlu1 %v1814_v17, %s2935_s16  ;;  %v3471_v0 = vpop.permute.xlu1 %691  ;;  %v947_v17 = vcombine.high %v902_v8, %v934_v40  ;;  %v3497_v40 = vrot.slane %v1685_v52, %v3019_v24  ;;  %v1070_v8 = vrot.slane %v1062_v49, %v3028_v31 }
  0xf5   :  { %v3469_v10 = vpop.permute.xlu0 %658  ;;  %v1885_v49 = vcombine.high %v1828_v6, %v3429_v57  ;;  %v1837_v6 = vcombine.high %v3385_v44, %v3402_v35 }
  0xf6   :  { %4242 = vst [vmem:[#allocation35_spill] sm:$0xff] %v3469_v10  ;;  %v1916_v11 = vcombine.low %v1860_v63, %v1876_v18  ;;  %v1764_v52 = vcombine.low %v3497_v40, %v3482_v56 }
  0xf8   :  { %1392 = vrot.lane.b32.xlu1 %v947_v17, %s2942_s26  ;;  %v3494_v20 = vrot.slane %v1916_v11, %v3028_v31  ;;  %v3505_v1 = vpop.permute.xlu1 %713  ;;  %v1917_v17 = vcombine.high %v1860_v63, %v1876_v18  ;;  %v1869_v63 = vcombine.high %v3415_v39, %v3440_v5  ;;  %v1082_v18 = vcombine.low %v1038_v61, %v1070_v8 }
  0xf9   :  { %v3499_v29 = vpop.permute.xlu0 %680  ;;  %v3533_v60 = vrot.slane %v1764_v52, %v3028_v31  ;;  %v1899_v39 = vrot.slane %v1885_v49, %v3028_v31  ;;  %v1063_v5 = vcombine.high %v3453_v59, %v3438_v30  ;;  %v1821_v52 = vcombine.high %v3348_v50, %v3368_v14 }
  0xfa   :  { %4244 = vst [vmem:[#allocation37_spill] sm:$0xff] %v3494_v20  ;;  %v1949_v11 = vcombine.high %v3491_v58, %v3494_v20  ;;  %v3553_v44 = vrot.slane %v1869_v63, %v3019_v24  ;;  %v1031_v30 = vcombine.high %v3474_v2, %v3450_v28  ;;  %v3564_v59 = vrot.slane %v1837_v6, %v3019_v24 }
  0xfb   :  { %v1083_v28 = vcombine.high %v1038_v61, %v1070_v8  ;;  %v1077_v2 = vrot.slane %v1063_v5, %v3028_v31 }
  0xfc   :  { %2246 = vrot.lane.b32.xlu1 %v1815_v13, %s2940_s24  ;;  %2232 = vrot.lane.b32.xlu0 %v1949_v11, %s2939_s0  ;;  %v3524_v12 = vpop.permute.xlu1 %735  ;;  %v1931_v13 = vrot.slane %v1917_v17, %v3028_v31  ;;  %v1853_v11 = vcombine.high %v3387_v34, %v3404_v53  ;;  %v1816_v34 = vcombine.low %v3533_v60, %v3529_v47 }
  0xfd   :  { %v3520_v15 = vpop.permute.xlu0 %702  ;;  %v3559_v53 = vcombine.high %v3144_v23, %v3147_v26  ;;  %v3576_v23 = vrot.slane %v1821_v52, %v3019_v24  ;;  %v1045_v63 = vrot.slane %v1031_v30, %v3028_v31 }
  0xfe   :  { %v1950_v35 = vcombine.low %v1899_v39, %v1931_v13  ;;  %v3567_v49 = vrot.slane %v1853_v11, %v3019_v24  ;;  %v1951_v52 = vcombine.high %v1899_v39, %v1931_v13 }
  0xff   :  { %4245 = vst [vmem:[#allocation38_spill] sm:$0xff] %v3559_v53  ;;  %v1085_v11 = vcombine.high %v1045_v63, %v1077_v2  ;;  %v1084_v13 = vcombine.low %v1045_v63, %v1077_v2  ;;  %v1901_v27 = vcombine.high %v3576_v23, %v3564_v59 }
 0x100   :  { %1400 = vrot.lane.b32.xlu1 %v948_v19, %s2943_s27  ;;  %1386 = vrot.lane.b32.xlu0 %v1082_v18, %s2941_s25  ;;  %v3548_v17 = vpop.permute.xlu1 %757  ;;  %v1932_v26 = vcombine.low %v3567_v49, %v3553_v44  ;;  %v1900_v19 = vcombine.low %v3576_v23, %v3564_v59 }
 0x101   :  { %v3546_v7 = vpop.permute.xlu0 %724  ;;  %v1222_v61 = vcombine.low %v3524_v12, %v3548_v17 }
 0x102   :  { %v1940_v8 = vrot.slane %v1932_v26, %v3028_v31 }
 0x103   :  { %v3606_v26 = vrot.slane %v1222_v61, %v3019_v24 }
 0x104   :  { %2254 = vrot.lane.b32.xlu1 %v1816_v34, %s2941_s25  ;;  %2240 = vrot.lane.b32.xlu0 %v1950_v35, %s2935_s16  ;;  %v3573_v14 = vpop.permute.xlu1 %779  ;;  %v1908_v34 = vrot.slane %v1900_v19, %v3028_v31 }
 0x105   :  { %v3571_v50 = vpop.permute.xlu0 %746 }
 0x106   :  { %v1952_v63 = vcombine.low %v1908_v34, %v1940_v8 }
 0x108   :  { %539 = vrot.lane.b32.xlu1 %v3559_v53, %s2944_s28  ;;  %1394 = vrot.lane.b32.xlu0 %v1083_v28, %s2942_s26  ;;  %v3589_v6 = vpop.permute.xlu1 %801  ;;  %v1953_v28 = vcombine.high %v1908_v34, %v1940_v8  ;;  %v1086_v8 = vcombine.low %v3417_v33, %v3442_v9  ;;  %v1102_v34 = vcombine.low %v3469_v10, %v3499_v29 }
 0x109   :  { %v3587_v18 = vpop.permute.xlu0 %768  ;;  %v1254_v39 = vcombine.low %v3573_v14, %v3589_v6 }
 0x10a   :  { %v1238_v5 = vcombine.low %v3571_v50, %v3587_v18 }
 0x10c   :  { %1410 = vrot.lane.b32.xlu1 %v1085_v11, %s2944_s28  ;;  %2248 = vrot.lane.b32.xlu0 %v1951_v52, %s2940_s24  ;;  %v3601_v30 = vpop.permute.xlu1 %1517  ;;  %v3609_v57 = vrot.slane %v1238_v5, %v3019_v24  ;;  %v3618_v52 = vrot.slane %v1254_v39, %v3019_v24  ;;  %v1118_v5 = vcombine.low %v3471_v0, %v3505_v1 }
 0x10d   :  { %v3599_v35 = vpop.permute.xlu0 %790 }
 0x110   :  { %2264 = vrot.lane.b32.xlu1 %v1953_v28, %s2942_s26  ;;  %1402 = vrot.lane.b32.xlu0 %v1084_v13, %s2943_s27  ;;  %v3615_v11 = vpop.permute.xlu1 %1539  ;;  %v1134_v28 = vcombine.low %v3520_v15, %v3546_v7  ;;  %v1286_v13 = vcombine.low %v3606_v26, %v3609_v57 }
 0x111   :  { %v3613_v19 = vpop.permute.xlu0 %812  ;;  %v1957_v61 = vcombine.high %v3601_v30, %v3615_v11 }
 0x112   :  { %v1270_v2 = vcombine.low %v3599_v35, %v3613_v19  ;;  %v3654_v25 = vrot.slane %v1134_v28, %v3019_v24 }
 0x113   :  { %v1971_v59 = vrot.slane %v1957_v61, %v3019_v24 }
 0x114   :  { %v3631_v53 = vrot.slane %v1270_v2, %v3019_v24  ;;  %547 = vrot.lane.b32.xlu1 %v3174_v38, %s2945_s1  ;;  %2256 = vrot.lane.b32.xlu0 %v1952_v63, %s2941_s25  ;;  %v3642_v20 = vpop.permute.xlu1 %1561  ;;  %v1933_v2 = vcombine.high %v3567_v49, %v3553_v44  ;;  %v949_v38 = vcombine.high %v3514_v32, %v3502_v54 }
 0x115   :  { %v3640_v39 = vpop.permute.xlu0 %1528  ;;  %v3651_v63 = vrot.slane %v1118_v5, %v3019_v24  ;;  %v1294_v44 = vrot.slane %v1286_v13, %v3028_v31  ;;  %v3662_v49 = vrot.slane %v1086_v8, %v3019_v24  ;;  %v3665_v32 = vrot.slane %v1102_v34, %v3019_v24 }
 0x116   :  { %v1318_v58 = vcombine.low %v3618_v52, %v3631_v53  ;;  %v1817_v5 = vcombine.high %v3533_v60, %v3529_v47  ;;  %v1947_v23 = vrot.slane %v1933_v2, %v3028_v31  ;;  %v1915_v47 = vrot.slane %v1901_v27, %v3028_v31 }
 0x117   :  { %v1182_v13 = vcombine.low %v3651_v63, %v3654_v25  ;;  %v1150_v60 = vcombine.low %v3662_v49, %v3665_v32  ;;  %v1765_v27 = vcombine.high %v3497_v40, %v3482_v56 }
 0x118   :  { %v1326_v22 = vrot.slane %v1318_v58, %v3028_v31  ;;  %1408 = vrot.lane.b32.xlu0 %v949_v38, %s2944_s28  ;;  %v3671_v28 = vpop.permute.xlu1 %1583  ;;  %v1954_v42 = vcombine.low %v1915_v47, %v1947_v23 }
 0x119   :  { %v3667_v54 = vpop.permute.xlu0 %1550  ;;  %v1989_v8 = vcombine.high %v3642_v20, %v3671_v28  ;;  %v1779_v40 = vrot.slane %v1765_v27, %v3028_v31  ;;  %v1319_v27 = vcombine.high %v3618_v52, %v3631_v53 }
 0x11a   :  { %v1973_v38 = vcombine.high %v3640_v39, %v3667_v54  ;;  %v1350_v58 = vcombine.low %v1294_v44, %v1326_v22 }
 0x11b   :  { %v1818_v10 = vcombine.low %v1779_v40, %v1811_v45  ;;  %v3754_v52 = vrot.slane %v1319_v27, %v3028_v31 }
 0x11c   :  { %v1987_v34 = vrot.slane %v1973_v38, %v3019_v24  ;;  %2262 = vrot.lane.b32.xlu0 %v1817_v5, %s2942_s26  ;;  %1418 = vrot.lane.b32.xlu1 %v1350_v58, %s2945_s1  ;;  %v3689_v2 = vpop.permute.xlu1 %1605  ;;  %v1190_v38 = vrot.slane %v1182_v13, %v3028_v31  ;;  %v1158_v58 = vrot.slane %v1150_v60, %v3028_v31 }
 0x11d   :  { %v3687_v61 = vpop.permute.xlu0 %1572 }
 0x11e   :  { %v2036_v21 = vcombine.low %v1971_v59, %v1987_v34  ;;  %v2037_v62 = vcombine.high %v1971_v59, %v1987_v34  ;;  %v2003_v59 = vrot.slane %v1989_v8, %v3019_v24  ;;  %v1214_v3 = vcombine.low %v1158_v58, %v1190_v38 }
 0x120   :  { %2272 = vrot.lane.b32.xlu1 %v1954_v42, %s2943_s27  ;;  %545 = vrot.lane.b32.xlu0 %v3172_v36, %s2945_s1  ;;  %v3700_v48 = vpop.permute.xlu1 %1627  ;;  %v1351_v36 = vcombine.high %v1294_v44, %v1326_v22  ;;  %v3730_v22 = vrot.slane %v2037_v62, %v3028_v31  ;;  %v1287_v44 = vcombine.high %v3606_v26, %v3609_v57 }
 0x121   :  { %v1595_v5 = vpop.permute.xlu0 %1594  ;;  %v1956_v26 = vcombine.low %v3601_v30, %v3615_v11 }
 0x122   :  { %v2005_v34 = vcombine.high %v3687_v61, %v1595_v5  ;;  %v1301_v27 = vrot.slane %v1287_v44, %v3028_v31  ;;  %v1151_v44 = vcombine.high %v3662_v49, %v3665_v32 }
 0x124   :  { %v2019_v42 = vrot.slane %v2005_v34, %v3019_v24  ;;  %553 = vrot.lane.b32.xlu1 %v3116_v37, %s2946_s4  ;;  %1416 = vrot.lane.b32.xlu0 %v1214_v3, %s2945_s1  ;;  %v3712_v13 = vpop.permute.xlu1 %1649  ;;  %v1955_v3 = vcombine.high %v1915_v47, %v1947_v23  ;;  %v1988_v23 = vcombine.low %v3642_v20, %v3671_v28 }
 0x125   :  { %v3709_v56 = vpop.permute.xlu0 %1616  ;;  %v2004_v47 = vcombine.low %v3687_v61, %v1595_v5  ;;  %v1972_v20 = vcombine.low %v3640_v39, %v3667_v54  ;;  %v1183_v5 = vcombine.high %v3651_v63, %v3654_v25  ;;  %v1819_v39 = vcombine.high %v1779_v40, %v1811_v45 }
 0x126   :  { %v2068_v8 = vcombine.low %v2003_v59, %v2019_v42  ;;  %v2069_v60 = vcombine.high %v2003_v59, %v2019_v42  ;;  %v3727_v59 = vrot.slane %v2036_v21, %v3028_v31  ;;  %v3786_v30 = vrot.slane %v1988_v23, %v3019_v24 }
 0x127   :  { %v3789_v11 = vrot.slane %v2004_v47, %v3019_v24  ;;  %v3800_v25 = vrot.slane %v1956_v26, %v3019_v24  ;;  %v3803_v63 = vrot.slane %v1972_v20, %v3019_v24  ;;  %v1165_v26 = vrot.slane %v1151_v44, %v3028_v31 }
 0x128   :  { %1426 = vrot.lane.b32.xlu1 %v1351_v36, %s2946_s4  ;;  %v3716_v16 = vrot.slane %v2068_v8, %v3028_v31  ;;  %v3719_v34 = vrot.slane %v2069_v60, %v3028_v31  ;;  %2270 = vrot.lane.b32.xlu0 %v1818_v10, %s2943_s27  ;;  %v3732_v36 = vpop.permute.xlu1 %1671  ;;  %v2092_v10 = vcombine.low %v3689_v2, %v3700_v48 }
 0x129   :  { %v3722_v37 = vpop.permute.xlu0 %1638  ;;  %v1215_v8 = vcombine.high %v1158_v58, %v1190_v38  ;;  %v2052_v40 = vcombine.low %v3786_v30, %v3789_v11  ;;  %v2020_v32 = vcombine.low %v3800_v25, %v3803_v63  ;;  %v1255_v20 = vcombine.high %v3573_v14, %v3589_v6 }
 0x12a   :  { %v2108_v42 = vcombine.low %v3709_v56, %v3722_v37  ;;  %v2088_v62 = vcombine.low %v3727_v59, %v3716_v16  ;;  %v2089_v53 = vcombine.high %v3727_v59, %v3716_v16  ;;  %v2090_v57 = vcombine.low %v3730_v22, %v3719_v34  ;;  %v4269_v16 = vld [vmem:[#allocation22_spill] sm:$0xff] }
 0x12b   :  { %v3762_v60 = vrot.slane %v2092_v10, %v3019_v24  ;;  %v1197_v10 = vrot.slane %v1183_v5, %v3028_v31  ;;  %v2060_v23 = vrot.slane %v2052_v40, %v3028_v31  ;;  %v1239_v44 = vcombine.high %v3571_v50, %v3587_v18 }
 0x12c   :  { %2280 = vrot.lane.b32.xlu1 %v1955_v3, %s2944_s28  ;;  %551 = vrot.lane.b32.xlu0 %v3092_v46, %s2946_s4  ;;  %v2124_v46 = vcombine.low %v3712_v13, %v3732_v36  ;;  %v3765_v3 = vrot.slane %v2108_v42, %v3019_v24  ;;  %v3838_v14 = vrot.slane %v1255_v20, %v3019_v24 }
 0x12d   :  { %v3743_v21 = vpop.permute.xlu0 %1660  ;;  %v1216_v47 = vcombine.low %v1165_v26, %v1197_v10  ;;  %v1353_v6 = vcombine.high %v1301_v27, %v3754_v52  ;;  %v3853_v18 = vrot.slane %v1239_v44, %v3019_v24  ;;  %v4253_v44 = vld [vmem:[#allocation10_spill] sm:$0xff] }
 0x12e   :  { %v3778_v61 = vrot.slane %v2124_v46, %v3019_v24  ;;  %v2156_v54 = vcombine.low %v3762_v60, %v3765_v3 }
 0x130   :  { %559 = vrot.lane.b32.xlu1 %v3114_v4, %s2947_s5  ;;  %1424 = vrot.lane.b32.xlu0 %v1215_v8, %s2946_s4  ;;  %v1352_v4 = vcombine.low %v1301_v27, %v3754_v52  ;;  %v2164_v42 = vrot.slane %v2156_v54, %v3028_v31  ;;  %v2028_v8 = vrot.slane %v2020_v32, %v3028_v31 }
 0x131   :  { %v3775_v28 = vpop.permute.xlu0 %1682  ;;  %v1223_v54 = vcombine.high %v3524_v12, %v3548_v17  ;;  %v1119_v12 = vcombine.high %v3471_v0, %v3505_v1  ;;  %v1135_v17 = vcombine.high %v3520_v15, %v3546_v7  ;;  %v4248_v0 = vld [vmem:[#allocation8_spill] sm:$0xff] }
 0x132   :  { %v2140_v38 = vcombine.low %v3743_v21, %v3775_v28 }
 0x133   :  { %v3850_v50 = vrot.slane %v1223_v54, %v3019_v24  ;;  %v3865_v27 = vrot.slane %v1119_v12, %v3019_v24  ;;  %v2021_v54 = vcombine.high %v3800_v25, %v3803_v63 }
 0x134   :  { %v3794_v58 = vrot.slane %v2140_v38, %v3019_v24  ;;  %1434 = vrot.lane.b32.xlu1 %v1352_v4, %s2947_s5  ;;  %2278 = vrot.lane.b32.xlu0 %v1819_v39, %s2944_s28  ;;  %v1271_v38 = vcombine.high %v3599_v35, %v3613_v19  ;;  %v4246_v4 = vcombine.low %v3287_v51, %v3290_v55  ;;  %v4247_v19 = vld [vmem:[#allocation35_spill] sm:$0xff] }
 0x135   :  { %v2084_v39 = vcombine.low %v2028_v8, %v2060_v23  ;;  %v1087_v35 = vcombine.high %v3417_v33, %v3442_v9  ;;  %v1103_v52 = vcombine.high %v4247_v19, %v3499_v29  ;;  %v1217_v9 = vcombine.high %v1165_v26, %v1197_v10  ;;  %v4254_v19 = vld [vmem:[#allocation11_spill] sm:$0xff] }
 0x136   :  { %v2188_v45 = vcombine.low %v3778_v61, %v3794_v58  ;;  %v3841_v51 = vrot.slane %v1271_v38, %v3019_v24  ;;  %v1302_v29 = vcombine.low %v3850_v50, %v3853_v18  ;;  %v2189_v32 = vcombine.high %v3778_v61, %v3794_v58 }
 0x137   :  { %v3877_v40 = vrot.slane %v1087_v35, %v3019_v24  ;;  %v2085_v26 = vcombine.high %v2028_v8, %v2060_v23  ;;  %v2053_v23 = vcombine.high %v3786_v30, %v3789_v11  ;;  %v4250_v8 = vld [vmem:[#allocation31_spill] sm:$0xff] }
 0x138   :  { %v2196_v49 = vrot.slane %v2188_v45, %v3028_v31  ;;  %557 = vrot.lane.b32.xlu0 %v3088_v43, %s2947_s5  ;;  %v1334_v15 = vcombine.low %v3838_v14, %v3841_v51  ;;  %v3868_v45 = vrot.slane %v1135_v17, %v3019_v24  ;;  %v1310_v20 = vrot.slane %v1302_v29, %v3028_v31 }
 0x139   :  { %v2203_v61 = vrot.slane %v2189_v32, %v3028_v31  ;;  %v1335_v29 = vcombine.high %v3838_v14, %v3841_v51  ;;  %v4257_v32 = vld [vmem:[#allocation34_spill] sm:$0xff] }
 0x13a   :  { %v2220_v46 = vcombine.low %v2164_v42, %v2196_v49  ;;  %v2221_v7 = vcombine.high %v2164_v42, %v2196_v49  ;;  %v3880_v42 = vrot.slane %v1103_v52, %v3019_v24  ;;  %v1342_v49 = vrot.slane %v1334_v15, %v3028_v31 }
 0x13b   :  { %v1198_v10 = vcombine.low %v3865_v27, %v3868_v45  ;;  %v2125_v52 = vcombine.high %v3712_v13, %v3732_v36  ;;  %v1349_v14 = vrot.slane %v1335_v29, %v3028_v31 }
 0x13c   :  { %2288 = vrot.lane.b32.xlu1 %v2220_v46, %s2945_s1  ;;  %1432 = vrot.lane.b32.xlu0 %v1216_v47, %s2947_s5  ;;  %v2157_v46 = vcombine.high %v3762_v60, %v3765_v3  ;;  %v4249_v47 = vld [vmem:[#allocation9_spill] sm:$0xff]  ;;  %v1166_v38 = vcombine.low %v3877_v40, %v3880_v42  ;;  %v4251_v60 = vld [vmem:[#allocation32_spill] sm:$0xff]  ;;  %v1355_v15 = vcombine.high %v1310_v20, %v1342_v49 }
 0x13d   :  { %v4252_v3 = vcombine.low %v4250_v8, %v4251_v60  ;;  %v2139_v13 = vrot.slane %v2125_v52, %v3019_v24  ;;  %v4260_v8 = vld [vmem:[#allocation14_spill] sm:$0xff] }
 0x13e   :  { %v1361_v43 = vpop.permute.xlu1 %1360 }
 0x13f   :  { %v1478_v5 = vsel %vm593_vm0, %v4246_v4, %v1361_v43  ;;  %v1354_v43 = vcombine.low %v1310_v20, %v1342_v49  ;;  %v4256_v49 = vld [vmem:[#allocation33_spill] sm:$0xff] }
 0x140   :  { %565 = vrot.lane.b32.xlu1 %v3125_v41, %s2948_s6  ;;  %2286 = vrot.lane.b32.xlu0 %v2084_v39, %s2945_s1  ;;  %v2171_v39 = vrot.slane %v2157_v46, %v3028_v31 }
 0x142   :  { %v1369_v55 = vpop.permute.xlu1 %1368  ;;  %v2222_v11 = vcombine.low %v2171_v39, %v2203_v61 }
 0x143   :  { %v1480_v41 = vsel %vm596_vm1, %v1478_v5, %v1369_v55  ;;  %v1206_v5 = vrot.slane %v1198_v10, %v3028_v31  ;;  %v1174_v55 = vrot.slane %v1166_v38, %v3028_v31 }
 0x144   :  { %1442 = vrot.lane.b32.xlu1 %v1353_v6, %s2948_s6  ;;  %563 = vrot.lane.b32.xlu0 %v4248_v0, %s2948_s6  ;;  %v2067_v6 = vrot.slane %v2053_v23, %v3028_v31  ;;  %v2141_v0 = vcombine.high %v3743_v21, %v3775_v28  ;;  %v2223_v28 = vcombine.high %v2171_v39, %v2203_v61 }
 0x145   :  { %v1218_v17 = vcombine.low %v1174_v55, %v1206_v5  ;;  %v1167_v61 = vcombine.high %v3877_v40, %v3880_v42 }
 0x146   :  { %v1377_v1 = vpop.permute.xlu1 %1376  ;;  %v2155_v36 = vrot.slane %v2141_v0, %v3019_v24  ;;  %v4265_v0 = vld [vmem:[#allocation17_spill] sm:$0xff] }
 0x147   :  { %v3871_v33 = vsel %vm599_vm2, %v1480_v41, %v1377_v1  ;;  %v2035_v41 = vrot.slane %v2021_v54, %v3028_v31  ;;  %v2093_v1 = vcombine.high %v3689_v2, %v3700_v48  ;;  %v4258_v48 = vcombine.low %v4256_v49, %v4257_v32  ;;  %v4266_v32 = vld [vmem:[#allocation21_spill] sm:$0xff] }
 0x148   :  { %2296 = vrot.lane.b32.xlu1 %v2221_v7, %s2946_s4  ;;  %1440 = vrot.lane.b32.xlu0 %v1217_v9, %s2948_s6  ;;  %v2109_v7 = vcombine.high %v3709_v56, %v3722_v37  ;;  %v4255_v9 = vld [vmem:[#allocation12_spill] sm:$0xff]  ;;  %v1219_v56 = vcombine.high %v1174_v55, %v1206_v5  ;;  %v1303_v37 = vcombine.high %v3850_v50, %v3853_v18  ;;  %v4262_v55 = vld [vmem:[#allocation37_spill] sm:$0xff] }
 0x149   :  { %v2086_v63 = vcombine.low %v2035_v41, %v2067_v6  ;;  %v2107_v10 = vrot.slane %v2093_v1, %v3019_v24  ;;  %v2204_v51 = vcombine.low %v2139_v13, %v2155_v36  ;;  %v2087_v50 = vcombine.high %v2035_v41, %v2067_v6  ;;  %v4264_v6 = vld [vmem:[#allocation38_spill] sm:$0xff] }
 0x14a   :  { %v1317_v38 = vrot.slane %v1303_v37, %v3028_v31  ;;  %v1181_v60 = vrot.slane %v1167_v61, %v3028_v31  ;;  %v4273_v61 = vcombine.high %v3730_v22, %v3719_v34 }
 0x14c   :  { %571 = vrot.lane.b32.xlu1 %v4249_v47, %s2949_s7  ;;  %2294 = vrot.lane.b32.xlu0 %v2085_v26, %s2946_s4  ;;  %v2123_v26 = vrot.slane %v2109_v7, %v3019_v24  ;;  %v1199_v47 = vcombine.high %v3865_v27, %v3868_v45  ;;  %v4259_v24 = vld [vmem:[#allocation13_spill] sm:$0xff]  ;;  %v1356_v27 = vcombine.low %v1317_v38, %v1349_v14 }
 0x14e   :  { %v1363_v58 = vpop.permute.xlu0 %1362  ;;  %v2172_v18 = vcombine.low %v2107_v10, %v2123_v26  ;;  %v2173_v52 = vcombine.high %v2107_v10, %v2123_v26  ;;  %v4268_v26 = vld [vmem:[#allocation20_spill] sm:$0xff] }
 0x14f   :  { %v1479_v4 = vsel %vm593_vm0, %v4252_v3, %v1363_v58  ;;  %v2212_v58 = vrot.slane %v2204_v51, %v3028_v31 }
 0x150   :  { %1450 = vrot.lane.b32.xlu1 %v1354_v43, %s2949_s7  ;;  %569 = vrot.lane.b32.xlu0 %v4253_v44, %s2949_s7  ;;  %v2180_v23 = vrot.slane %v2172_v18, %v3028_v31  ;;  %v4261_v44 = vld [vmem:[#allocation36_spill] sm:$0xff] }
 0x152   :  { %v1371_v30 = vpop.permute.xlu0 %1370  ;;  %v2224_v42 = vcombine.low %v2180_v23, %v2212_v58  ;;  %v2225_v7 = vcombine.high %v2180_v23, %v2212_v58 }
 0x153   :  { %v1481_v12 = vsel %vm596_vm1, %v1479_v4, %v1371_v30  ;;  %v4263_v30 = vcombine.low %v4261_v44, %v4262_v55 }
 0x154   :  { %2304 = vrot.lane.b32.xlu1 %v2222_v11, %s2947_s5  ;;  %1448 = vrot.lane.b32.xlu0 %v1218_v17, %s2949_s7 }
 0x156   :  { %v1379_v35 = vpop.permute.xlu0 %1378 }
 0x157   :  { %v3917_v25 = vsel %vm599_vm2, %v1481_v12, %v1379_v35  ;;  %v2205_v12 = vcombine.high %v2139_v13, %v2155_v36  ;;  %v1357_v35 = vcombine.high %v1317_v38, %v1349_v14  ;;  %v2187_v36 = vrot.slane %v2173_v52, %v3028_v31  ;;  %v4272_v38 = vld [vmem:[#allocation28_spill] sm:$0xff] }
 0x158   :  { %577 = vrot.lane.b32.xlu1 %v4254_v19, %s2950_s8  ;;  %2302 = vrot.lane.b32.xlu0 %v2086_v63, %s2947_s5 }
 0x15c   :  { %1458 = vrot.lane.b32.xlu1 %v1355_v15, %s2950_s8  ;;  %575 = vrot.lane.b32.xlu0 %v4255_v9, %s2950_s8  ;;  %v2219_v15 = vrot.slane %v2205_v12, %v3028_v31  ;;  %v4276_v12 = vld [vmem:[#allocation18_spill] sm:$0xff] }
 0x15e   :  { %v2231_v21 = vpop.permute.xlu1 %2230  ;;  %v2227_v37 = vcombine.high %v2187_v36, %v2219_v15 }
 0x15f   :  { %v2348_v2 = vsel %vm593_vm0, %v4258_v48, %v2231_v21  ;;  %v4267_v48 = vld [vmem:[#allocation16_spill] sm:$0xff] }
 0x160   :  { %2312 = vrot.lane.b32.xlu1 %v2223_v28, %s2948_s6  ;;  %1456 = vrot.lane.b32.xlu0 %v1219_v56, %s2950_s8  ;;  %v2226_v28 = vcombine.low %v2187_v36, %v2219_v15 }
 0x162   :  { %v1385_v46 = vpop.permute.xlu1 %1384 }
 0x163   :  { %v1484_v20 = vsel %vm602_vm3, %v3871_v33, %v1385_v46  ;;  %v1213_v33 = vrot.slane %v1199_v47, %v3028_v31  ;;  %v595_v31 = vsel %vm593_vm0, %v4267_v48, %v4266_v32  ;;  %v4270_v46 = vld [vmem:[#allocation24_spill] sm:$0xff] }
 0x164   :  { %583 = vrot.lane.b32.xlu1 %v4259_v24, %s2951_s9  ;;  %2310 = vrot.lane.b32.xlu0 %v2087_v50, %s2948_s6  ;;  %v598_v14 = vsel %vm596_vm1, %v595_v31, %v4268_v26  ;;  %v4271_v50 = vld [vmem:[#allocation26_spill] sm:$0xff] }
 0x165   :  { %v1220_v4 = vcombine.low %v1181_v60, %v1213_v33  ;;  %v1221_v13 = vcombine.high %v1181_v60, %v1213_v33  ;;  %v601_v59 = vsel %vm599_vm2, %v598_v14, %v4269_v16 }
 0x166   :  { %v2239_v43 = vpop.permute.xlu1 %2238  ;;  %v604_v47 = vsel %vm602_vm3, %v601_v59, %v4270_v46 }
 0x167   :  { %v2350_v45 = vsel %vm596_vm1, %v2348_v2, %v2239_v43  ;;  %v607_v18 = vsel %vm605_vm4, %v604_v47, %v4271_v50 }
 0x168   :  { %1466 = vrot.lane.b32.xlu1 %v1356_v27, %s2951_s9  ;;  %581 = vrot.lane.b32.xlu0 %v4260_v8, %s2951_s9 }
 0x16a   :  { %v1393_v40 = vpop.permute.xlu1 %1392 }
 0x16b   :  { %v1486_v3 = vsel %vm605_vm4, %v1484_v20, %v1393_v40 }
 0x16c   :  { %2320 = vrot.lane.b32.xlu1 %v2224_v42, %s2949_s7  ;;  %1464 = vrot.lane.b32.xlu0 %v1220_v4, %s2951_s9 }
 0x16e   :  { %v2247_v5 = vpop.permute.xlu1 %2246  ;;  %v2233_v39 = vpop.permute.xlu0 %2232 }
 0x16f   :  { %v2352_v54 = vsel %vm599_vm2, %v2350_v45, %v2247_v5  ;;  %v2349_v11 = vsel %vm593_vm0, %v4263_v30, %v2233_v39  ;;  %v4274_v39 = vld [vmem:[#allocation19_spill] sm:$0xff] }
 0x170   :  { %589 = vrot.lane.b32.xlu1 %v4264_v6, %s2952_s10  ;;  %2318 = vrot.lane.b32.xlu0 %v2088_v62, %s2949_s7 }
 0x172   :  { %v1401_v17 = vpop.permute.xlu1 %1400  ;;  %v1387_v41 = vpop.permute.xlu0 %1386 }
 0x173   :  { %v1488_v63 = vsel %vm608_vm5, %v1486_v3, %v1401_v17  ;;  %v1485_v19 = vsel %vm602_vm3, %v3917_v25, %v1387_v41  ;;  %v4277_v41 = vld [vmem:[#allocation23_spill] sm:$0xff] }
 0x174   :  { %1474 = vrot.lane.b32.xlu1 %v1357_v35, %s2952_s10  ;;  %587 = vrot.lane.b32.xlu0 %v4265_v0, %s2952_s10 }
 0x176   :  { %v2255_v1 = vpop.permute.xlu1 %2254  ;;  %v2241_v62 = vpop.permute.xlu0 %2240 }
 0x177   :  { %v2354_v9 = vsel %vm602_vm3, %v2352_v54, %v2255_v1  ;;  %v2351_v29 = vsel %vm596_vm1, %v2349_v11, %v2241_v62  ;;  %v4275_v54 = vld [vmem:[#allocation15_spill] sm:$0xff] }
 0x178   :  { %2328 = vrot.lane.b32.xlu1 %v2225_v7, %s2950_s8  ;;  %1472 = vrot.lane.b32.xlu0 %v1221_v13, %s2952_s10  ;;  %v594_v44 = vsel %vm593_vm0, %v4275_v54, %v4274_v39  ;;  %v4279_v1 = vld [vmem:[#allocation27_spill] sm:$0xff]  ;;  %v4281_v13 = vld [vmem:[#allocation30_spill] sm:$0xff] }
 0x179   :  { %v597_v17 = vsel %vm596_vm1, %v594_v44, %v4276_v12 }
 0x17a   :  { %v540_v25 = vpop.permute.xlu1 %539  ;;  %v1395_v21 = vpop.permute.xlu0 %1394  ;;  %v600_v35 = vsel %vm599_vm2, %v597_v17, %v4277_v41 }
 0x17b   :  { %v1487_v49 = vsel %vm605_vm4, %v1485_v19, %v1395_v21  ;;  %v4278_v19 = vld [vmem:[#allocation25_spill] sm:$0xff] }
 0x17c   :  { %2336 = vrot.lane.b32.xlu1 %v2226_v28, %s2951_s9  ;;  %2326 = vrot.lane.b32.xlu0 %v2089_v53, %s2950_s8  ;;  %v603_v52 = vsel %vm602_vm3, %v600_v35, %v4278_v19 }
 0x17d   :  { %v606_v62 = vsel %vm605_vm4, %v603_v52, %v4279_v1 }
 0x17e   :  { %v1411_v2 = vpop.permute.xlu1 %1410  ;;  %v2249_v56 = vpop.permute.xlu0 %2248 }
 0x17f   :  { %v2353_v10 = vsel %vm599_vm2, %v2351_v29, %v2249_v56 }
 0x180   :  { %2344 = vrot.lane.b32.xlu1 %v2227_v37, %s2952_s10  ;;  %2334 = vrot.lane.b32.xlu0 %v2090_v57, %s2951_s9  ;;  %v610_v57 = vsel %vm608_vm5, %v607_v18, %v4272_v38 }
 0x181   :  { %v613_v58 = vsel %vm611_vm6, %v610_v57, %v540_v25 }
 0x182   :  { %v2265_v53 = vpop.permute.xlu1 %2264  ;;  %v1403_v51 = vpop.permute.xlu0 %1402 }
 0x183   :  { %v1489_v20 = vsel %vm608_vm5, %v1487_v49, %v1403_v51 }
 0x184   :  { %v1491_v24 = vsel %vm611_vm6, %v1489_v20, %v1411_v2  ;;  %2342 = vrot.lane.b32.xlu0 %v4273_v61, %s2952_s10 }
 0x186   :  { %v548_v43 = vpop.permute.xlu1 %547  ;;  %v2257_v27 = vpop.permute.xlu0 %2256 }
 0x187   :  { %v616_v45 = vsel %vm614_vm7, %v613_v58, %v548_v43  ;;  %v2355_v33 = vsel %vm602_vm3, %v2353_v10, %v2257_v27 }
 0x188   :  { %v2357_v23 = vsel %vm605_vm4, %v2355_v33, %v2265_v53 }
 0x18a   :  { %v1409_v8 = vpop.permute.xlu0 %1408 }
 0x18b   :  { %v1490_v60 = vsel %vm611_vm6, %v1488_v63, %v1409_v8 }
 0x18e   :  { %v1419_v40 = vpop.permute.xlu1 %1418  ;;  %v2263_v42 = vpop.permute.xlu0 %2262 }
 0x18f   :  { %v1493_v3 = vsel %vm614_vm7, %v1491_v24, %v1419_v40  ;;  %v2356_v34 = vsel %vm605_vm4, %v2354_v9, %v2263_v42  ;;  %v4280_v9 = vld [vmem:[#allocation29_spill] sm:$0xff] }
 0x190   :  { %v609_v29 = vsel %vm608_vm5, %v606_v62, %v4280_v9 }
 0x191   :  { %v612_v36 = vsel %vm611_vm6, %v609_v29, %v4281_v13 }
 0x192   :  { %v2273_v22 = vpop.permute.xlu1 %2272  ;;  %v546_v5 = vpop.permute.xlu0 %545 }
 0x193   :  { %v2359_v4 = vsel %vm608_vm5, %v2357_v23, %v2273_v22  ;;  %v615_v21 = vsel %vm614_vm7, %v612_v36, %v546_v5 }
 0x196   :  { %v554_v55 = vpop.permute.xlu1 %553  ;;  %v1417_v11 = vpop.permute.xlu0 %1416 }
 0x197   :  { %v619_v30 = vsel %vm617_vm8, %v616_v45, %v554_v55  ;;  %v1492_v6 = vsel %vm614_vm7, %v1490_v60, %v1417_v11 }
 0x19a   :  { %v1427_v63 = vpop.permute.xlu1 %1426  ;;  %v2271_v15 = vpop.permute.xlu0 %2270 }
 0x19b   :  { %v1495_v0 = vsel %vm617_vm8, %v1493_v3, %v1427_v63  ;;  %v2358_v7 = vsel %vm608_vm5, %v2356_v34, %v2271_v15 }
 0x19e   :  { %v2281_v25 = vpop.permute.xlu1 %2280  ;;  %v552_v49 = vpop.permute.xlu0 %551 }
 0x19f   :  { %v4052_v28 = vsel %vm611_vm6, %v2359_v4, %v2281_v25  ;;  %v618_v32 = vsel %vm617_vm8, %v615_v21, %v552_v49 }
 0x1a2   :  { %v560_v48 = vpop.permute.xlu1 %559  ;;  %v1425_v2 = vpop.permute.xlu0 %1424 }
 0x1a3   :  { %v622_v31 = vsel %vm620_vm9, %v619_v30, %v560_v48  ;;  %v1494_v56 = vsel %vm617_vm8, %v1492_v6, %v1425_v2 }
 0x1a6   :  { %v1435_v37 = vpop.permute.xlu1 %1434  ;;  %v2279_v26 = vpop.permute.xlu0 %2278 }
 0x1a7   :  { %v1497_v10 = vsel %vm620_vm9, %v1495_v0, %v1435_v37  ;;  %v4059_v14 = vsel %vm611_vm6, %v2358_v7, %v2279_v26 }
 0x1aa   :  { %v558_v16 = vpop.permute.xlu0 %557 }
 0x1ab   :  { %v621_v59 = vsel %vm620_vm9, %v618_v32, %v558_v16 }
 0x1ae   :  { %v2289_v53 = vpop.permute.xlu1 %2288  ;;  %v1433_v51 = vpop.permute.xlu0 %1432 }
 0x1af   :  { %v1496_v46 = vsel %vm620_vm9, %v1494_v56, %v1433_v51  ;;  %v2363_v32 = vsel %vm614_vm7, %v4052_v28, %v2289_v53 }
 0x1b2   :  { %v566_v47 = vpop.permute.xlu1 %565  ;;  %v4063_v20 = vpop.permute.xlu0 %2286 }
 0x1b3   :  { %v625_v44 = vsel %vm623_vm10, %v622_v31, %v566_v47  ;;  %v2362_v51 = vsel %vm614_vm7, %v4059_v14, %v4063_v20 }
 0x1b6   :  { %v1443_v50 = vpop.permute.xlu1 %1442  ;;  %v564_v18 = vpop.permute.xlu0 %563 }
 0x1b7   :  { %v1499_v55 = vsel %vm623_vm10, %v1497_v10, %v1443_v50  ;;  %v624_v15 = vsel %vm623_vm10, %v621_v59, %v564_v18 }
 0x1ba   :  { %v2297_v24 = vpop.permute.xlu1 %2296  ;;  %v1441_v38 = vpop.permute.xlu0 %1440 }
 0x1bb   :  { %v1498_v1 = vsel %vm623_vm10, %v1496_v46, %v1441_v38  ;;  %v2365_v2 = vsel %vm617_vm8, %v2363_v32, %v2297_v24 }
 0x1be   :  { %v572_v57 = vpop.permute.xlu1 %571  ;;  %v2295_v61 = vpop.permute.xlu0 %2294 }
 0x1bf   :  { %v628_v11 = vsel %vm626_vm11, %v625_v44, %v572_v57  ;;  %v2364_v53 = vsel %vm617_vm8, %v2362_v51, %v2295_v61 }
 0x1c2   :  { %v1451_v58 = vpop.permute.xlu1 %1450  ;;  %v570_v43 = vpop.permute.xlu0 %569 }
 0x1c3   :  { %v1501_v6 = vsel %vm626_vm11, %v1499_v55, %v1451_v58  ;;  %v627_v7 = vsel %vm626_vm11, %v624_v15, %v570_v43 }
 0x1c6   :  { %v2305_v27 = vpop.permute.xlu1 %2304  ;;  %v1449_v45 = vpop.permute.xlu0 %1448 }
 0x1c7   :  { %v1500_v9 = vsel %vm626_vm11, %v1498_v1, %v1449_v45  ;;  %v2367_v37 = vsel %vm620_vm9, %v2365_v2, %v2305_v27  ;;  %v2956_v1 = vmov 683565275  }
 0x1ca   :  { %v578_v33 = vpop.permute.xlu1 %577  ;;  %v2303_v23 = vpop.permute.xlu0 %2302 }
 0x1cb   :  { %v631_v12 = vsel %vm629_vm12, %v628_v11, %v578_v33  ;;  %v2366_v50 = vsel %vm620_vm9, %v2364_v53, %v2303_v23 }
 0x1ce   :  { %v1459_v8 = vpop.permute.xlu1 %1458  ;;  %v576_v60 = vpop.permute.xlu0 %575 }
 0x1cf   :  { %v1503_v17 = vsel %vm629_vm12, %v1501_v6, %v1459_v8  ;;  %v630_v29 = vsel %vm629_vm12, %v627_v7, %v576_v60  ;;  %v2953_v6 = vmov 2102212464   ;;  %v2957_v7 = vmov 2475754826  }
 0x1d2   :  { %v2313_v40 = vpop.permute.xlu1 %2312  ;;  %v1457_v42 = vpop.permute.xlu0 %1456 }
 0x1d3   :  { %v1502_v13 = vsel %vm629_vm12, %v1500_v9, %v1457_v42  ;;  %v2369_v26 = vsel %vm623_vm10, %v2367_v37, %v2313_v40 }
 0x1d6   :  { %v584_v3 = vpop.permute.xlu1 %583  ;;  %v2311_v34 = vpop.permute.xlu0 %2310 }
 0x1d7   :  { %v634_v41 = vsel %vm632_vm13, %v631_v12, %v584_v3  ;;  %v2368_v38 = vsel %vm623_vm10, %v2366_v50, %v2311_v34 }
 0x1da   :  { %v1467_v22 = vpop.permute.xlu1 %1466  ;;  %v582_v4 = vpop.permute.xlu0 %581 }
 0x1db   :  { %v1505_v35 = vsel %vm632_vm13, %v1503_v17, %v1467_v22  ;;  %v633_v25 = vsel %vm632_vm13, %v630_v29, %v582_v4  ;;  %v2954_v17 = vmov 920167782   ;;  %v2958_v29 = vmov 2131351028  }
 0x1de   :  { %v2321_v5 = vpop.permute.xlu1 %2320  ;;  %v1465_v39 = vpop.permute.xlu0 %1464 }
 0x1df   :  { %v1504_v21 = vsel %vm632_vm13, %v1502_v13, %v1465_v39  ;;  %v2371_v59 = vsel %vm626_vm11, %v2369_v26, %v2321_v5 }
 0x1e2   :  { %v590_v54 = vpop.permute.xlu1 %589  ;;  %v2319_v30 = vpop.permute.xlu0 %2318 }
 0x1e3   :  { %v637_v19 = vsel %vm635_vm14, %v634_v41, %v590_v54  ;;  %v2370_v58 = vsel %vm626_vm11, %v2368_v38, %v2319_v30 }
 0x1e6   :  { %v1475_v63 = vpop.permute.xlu1 %1474  ;;  %v588_v0 = vpop.permute.xlu0 %587 }
 0x1e7   :  { %v1507_v52 = vsel %vm635_vm14, %v1505_v35, %v1475_v63  ;;  %v636_v48 = vsel %vm635_vm14, %v633_v25, %v588_v0 }
 0x1e8   :  { %v2379_v62 = vmul.f32 %v1507_v52, %v637_v19  ;;  %v2955_v19 = vmov 1326507024  }
 0x1ea   :  { %v2329_v36 = vpop.permute.xlu1 %2328  ;;  %v1473_v49 = vpop.permute.xlu0 %1472 }
 0x1eb   :  { %v1506_v31 = vsel %vm635_vm14, %v1504_v21, %v1473_v49  ;;  %v2373_v28 = vsel %vm629_vm12, %v2371_v59, %v2329_v36 }
 0x1ec   :  { %v2378_v56 = vmul.f32 %v1506_v31, %v636_v48 }
 0x1ee   :  { %v2337_v10 = vpop.permute.xlu1 %2336  ;;  %v2327_v16 = vpop.permute.xlu0 %2326 }
 0x1ef   :  { %v2375_v46 = vsel %vm632_vm13, %v2373_v28, %v2337_v10  ;;  %v2372_v14 = vsel %vm629_vm12, %v2370_v58, %v2327_v16 }
 0x1f2   :  { %v2345_v47 = vpop.permute.xlu1 %2344  ;;  %v2335_v24 = vpop.permute.xlu0 %2334 }
 0x1f3   :  { %v2377_v18 = vsel %vm635_vm14, %v2375_v46, %v2345_v47  ;;  %v2374_v43 = vsel %vm632_vm13, %v2372_v14, %v2335_v24 }
 0x1f4   :  { %v4100_v57 = vadd.f32 %v2379_v62, %v2377_v18 }
 0x1f6   :  { %v2489_v20 = vand.u32 2139095040, %v4100_v57  ;;  %v2486_v61 = vand.u32 2147483647, %v4100_v57  ;;  %v2343_v27 = vpop.permute.xlu0 %2342  ;;  %vm2488_vm13 = vcmp.lt.s32.totalorder %v4100_v57, 0 }
 0x1f7   :  { %v2376_v33 = vsel %vm635_vm14, %v2374_v43, %v2343_v27 }
 0x1f8   :  { %v2490_v45 = vshrl.u32 %v2489_v20, 23  ;;  %v4108_v23 = vadd.f32 %v2378_v56, %v2376_v33  ;;  %v2493_v60 = vand.u32 8388607, %v2486_v61  ;;  %vm2487_vm14 = vcmp.le.f32.partialorder %v2486_v61, 0.7853982 }
 0x1fa   :  { %v2831_v8 = vadd.s32 4294967169, %v2490_v45  ;;  %v2385_v40 = vand.u32 2139095040, %v4108_v23  ;;  %v2382_v42 = vand.u32 2147483647, %v4108_v23  ;;  %v2494_v22 = vor.u32 8388608, %v2493_v60 }
 0x1fc   :  { %v2496_v3 = vadd.s32 1, %v2831_v8  ;;  %v2386_v34 = vshrl.u32 %v2385_v40, 23  ;;  %v4116_v39 = vand.u32 8388607, %v2382_v42  ;;  %v4118_v11 = vshll.u32 %v2494_v22, 8 }
 0x1fe   :  { %vm2497_vm15 = vcmp.gt.s32.totalorder %v2496_v3, 0  ;;  %v2827_v5 = vadd.s32 4294967169, %v2386_v34  ;;  %v2390_v35 = vor.u32 8388608, %v4116_v39 }
 0x1ff   :  { %v2498_v4 = vsel %vm2497_vm15, %v2496_v3, 0  ;;  %vm2384_vm15 = vcmp.lt.s32.totalorder %v4108_v23, 0 }
 0x200   :  { %v2499_v54 = vshrl.u32 %v2498_v4, 5  ;;  %v2500_v44 = vand.u32 31, %v2498_v4  ;;  %v2392_v55 = vadd.s32 1, %v2827_v5 }
 0x202   :  { %v2501_v30 = vsub.s32 32, %v2500_v44  ;;  %v2512_v12 = vshll.u32 %v2953_v6, %v2500_v44  ;;  %v2515_v41 = vshll.u32 %v2954_v17, %v2500_v44  ;;  %vm2393_vm0 = vcmp.gt.s32.totalorder %v2392_v55, 0 }
 0x203   :  { %vm2521_vm1 = vcmp.lt.s32.totalorder %v2499_v54, 4  ;;  %v2394_v0 = vsel %vm2393_vm0, %v2392_v55, 0  ;;  %v2503_v62 = vshll.u32 %v2956_v1, %v2500_v44  ;;  %v2506_v21 = vshll.u32 %v2957_v7, %v2500_v44 }
 0x204   :  { %v2513_v63 = vshrl.u32 %v2954_v17, %v2501_v30  ;;  %v2516_v52 = vshrl.u32 %v2955_v19, %v2501_v30  ;;  %v2396_v15 = vand.u32 31, %v2394_v0  ;;  %v2504_v9 = vshrl.u32 %v2957_v7, %v2501_v30 }
 0x205   :  { %v2507_v13 = vshrl.u32 %v2958_v29, %v2501_v30  ;;  %v2510_v49 = vshrl.u32 %v2953_v6, %v2501_v30  ;;  %v4122_v32 = vshrl.u32 %v2394_v0, 5  ;;  %v2509_v31 = vshll.u32 %v2958_v29, %v2500_v44 }
 0x206   :  { %v2514_v36 = vor.u32 %v2513_v63, %v2512_v12  ;;  %v2517_v25 = vor.u32 %v2516_v52, %v2515_v41  ;;  %v2397_v48 = vsub.s32 32, %v2396_v15  ;;  %vm2518_vm2 = vcmp.lt.s32.totalorder %v2499_v54, 1 }
 0x207   :  { %v2411_v56 = vshll.u32 %v2954_v17, %v2396_v15  ;;  %v2505_v37 = vor.u32 %v2504_v9, %v2503_v62  ;;  %v2508_v10 = vor.u32 %v2507_v13, %v2506_v21  ;;  %v2511_v51 = vor.u32 %v2510_v49, %v2509_v31 }
 0x208   :  { %v2527_v2 = vsel %vm2521_vm1, %v2514_v36, 920167782  ;;  %v2531_v26 = vsel %vm2521_vm1, %v2517_v25, 1326507024  ;;  %v2409_v16 = vshrl.u32 %v2954_v17, %v2397_v48  ;;  %v2412_v59 = vshrl.u32 %v2955_v19, %v2397_v48 }
 0x209   :  { %v2408_v28 = vshll.u32 %v2953_v6, %v2396_v15  ;;  %v2502_v53 = vshrl.u32 %v2956_v1, %v2501_v30  ;;  %vm2520_vm3 = vcmp.lt.s32.totalorder %v2499_v54, 3  ;;  %v2526_v46 = vsel %vm2518_vm2, %v2505_v37, %v2508_v10 }
 0x20a   :  { %v2413_v47 = vor.u32 %v2412_v59, %v2411_v56  ;;  %vm2519_vm4 = vcmp.lt.s32.totalorder %v2499_v54, 2  ;;  %v2523_v50 = vsel %vm2521_vm1, %v2511_v51, 2102212464  ;;  %v2528_v18 = vsel %vm2520_vm3, %v2511_v51, %v2527_v2 }
 0x20b   :  { %vm2417_vm5 = vcmp.lt.s32.totalorder %v4122_v32, 4  ;;  %v2529_v24 = vsel %vm2519_vm4, %v2526_v46, %v2528_v18  ;;  %v2530_v38 = vsel %vm2518_vm2, %v2508_v10, %v2511_v51  ;;  %v2532_v58 = vsel %vm2520_vm3, %v2514_v36, %v2531_v26 }
 0x20c   :  { %v2410_v14 = vor.u32 %v2409_v16, %v2408_v28  ;;  %v2522_v20 = vsel %vm2518_vm2, %v2502_v53, %v2505_v37  ;;  %v2524_v43 = vsel %vm2520_vm3, %v2508_v10, %v2523_v50  ;;  %v2533_v27 = vsel %vm2519_vm4, %v2530_v38, %v2532_v58 }
 0x20d   :  { %v4135_v45 = vmul.u32.u64.low %v4118_v11, %v2533_v27  ;;  %v4136_v33 = vmul.u32.u64.high %v4118_v11, %v2533_v27, %v4135_v45  ;;  %v4139_v8 = vmul.u32.u64.low %v4118_v11, %v2529_v24  ;;  %v4140_v60 = vmul.u32.u64.high %v4118_v11, %v2529_v24, %v4139_v8 }
 0x20e   :  { %v2427_v40 = vsel %vm2417_vm5, %v2413_v47, 1326507024  ;;  %v2399_v3 = vshll.u32 %v2956_v1, %v2396_v15  ;;  %v2400_v34 = vshrl.u32 %v2957_v7, %v2397_v48  ;;  %v2525_v22 = vsel %vm2519_vm4, %v2522_v20, %v2524_v43 }
 0x20f   :  { %v2402_v4 = vshll.u32 %v2957_v7, %v2396_v15  ;;  %v2403_v5 = vshrl.u32 %v2958_v29, %v2397_v48  ;;  %v2406_v39 = vshrl.u32 %v2953_v6, %v2397_v48  ;;  %v2423_v44 = vsel %vm2417_vm5, %v2410_v14, 920167782 }
 0x210   :  { %v2401_v55 = vor.u32 %v2400_v34, %v2399_v3  ;;  %v2405_v30 = vshll.u32 %v2958_v29, %v2396_v15  ;;  %v2430_v12 = vshll.u32 %v2390_v35, 8  ;;  %vm2543_vm6 = vc.u32 %v4136_v33, %v4139_v8 }
 0x211   :  { %v2544_v17 = vadd.s32 1, %v4140_v60  ;;  %v2404_v41 = vor.u32 %v2403_v5, %v2402_v4  ;;  %vm2416_vm7 = vcmp.lt.s32.totalorder %v4122_v32, 3  ;;  %v2541_v63 = vmul.u32 %v4118_v11, %v2525_v22 }
 0x212   :  { %v2407_v54 = vor.u32 %v2406_v39, %v2405_v30  ;;  %vm2414_vm8 = vcmp.lt.s32.totalorder %v4122_v32, 1  ;;  %v2428_v6 = vsel %vm2416_vm7, %v2410_v14, %v2427_v40  ;;  %v2398_v52 = vshrl.u32 %v2956_v1, %v2397_v48 }
 0x213   :  { %v2545_v19 = vsel %vm2543_vm6, %v2544_v17, %v4140_v60  ;;  %vm2415_vm9 = vcmp.lt.s32.totalorder %v4122_v32, 2  ;;  %v2422_v35 = vsel %vm2414_vm8, %v2401_v55, %v2404_v41  ;;  %v2542_v24 = vadd.s32 %v4139_v8, %v4136_v33 }
 0x214   :  { %v2546_v0 = vadd.s32 %v2545_v19, %v2541_v63  ;;  %v2419_v15 = vsel %vm2417_vm5, %v2407_v54, 2102212464  ;;  %v2424_v11 = vsel %vm2416_vm7, %v2407_v54, %v2423_v44  ;;  %v2426_v62 = vsel %vm2414_vm8, %v2404_v41, %v2407_v54 }
 0x215   :  { %v2418_v7 = vsel %vm2414_vm8, %v2398_v52, %v2401_v55  ;;  %v2425_v9 = vsel %vm2415_vm9, %v2422_v35, %v2424_v11  ;;  %v2429_v29 = vsel %vm2415_vm9, %v2426_v62, %v2428_v6  ;;  %v2420_v36 = vsel %vm2416_vm7, %v2404_v41, %v2419_v15 }
 0x216   :  { %v2547_v13 = vadd.s32 536870912, %v2546_v0  ;;  %v4164_v25 = vmul.u32.u64.low %v2430_v12, %v2429_v29  ;;  %v4165_v1 = vmul.u32.u64.high %v2430_v12, %v2429_v29, %v4164_v25  ;;  %v2421_v31 = vsel %vm2415_vm9, %v2418_v7, %v2420_v36 }
 0x217   :  { %v4167_v21 = vmul.u32.u64.low %v2430_v12, %v2425_v9  ;;  %v4168_v49 = vmul.u32.u64.high %v2430_v12, %v2425_v9, %v4167_v21  ;;  %v2437_v10 = vmul.u32 %v2430_v12, %v2421_v31  ;;  %vm2383_vm0 = vcmp.le.f32.partialorder %v2382_v42, 0.7853982 }
 0x218   :  { %v2548_v48 = vshrl.u32 %v2547_v13, 30  ;;  %vm2590_vm1 = vcmask 523264   ;;  %vm2578_vm8 = vweird.f32 %v4100_v57 }
 0x219   :  { %vm2439_vm10 = vc.u32 %v4165_v1, %v4167_v21  ;;  %v2440_v56 = vadd.s32 1, %v4168_v49  ;;  %v2438_v55 = vadd.s32 %v4167_v21, %v4165_v1 }
 0x21a   :  { %v2549_v2 = vshll.u32 %v2548_v48, 30  ;;  %v2572_v12 = vsub.s32 4, %v2548_v48 }
 0x21b   :  { %v2441_v26 = vsel %vm2439_vm10, %v2440_v56, %v4168_v49 }
 0x21c   :  { %v2550_v37 = vsub.s32 %v2546_v0, %v2549_v2  ;;  %v2442_v32 = vadd.s32 %v2441_v26, %v2437_v10  ;;  %v2573_v35 = vsel %vm2488_vm13, %v2572_v12, %v2548_v48 }
 0x21d   :  { %v2575_v62 = vsel %vm2487_vm14, 0, %v2573_v35 }
 0x21e   :  { %v2552_v16 = vsub.s32 0, %v2550_v37  ;;  %v2443_v51 = vadd.s32 536870912, %v2442_v32  ;;  %v2579_v9 = vadd.s32 3, %v2575_v62  ;;  %v2789_v1 = vand.u32 3, %v2575_v62 }
 0x220   :  { %v2832_v59 = vmin.u32 %v2552_v16, %v2550_v37  ;;  %v2444_v53 = vshrl.u32 %v2443_v51, 30  ;;  %v2580_v25 = vand.u32 3, %v2579_v9  ;;  %vm2794_vm3 = vcmp.eq.s32.totalorder %v2789_v1, 2 }
 0x221   :  { %vm2791_vm5 = vcmp.eq.s32.totalorder %v2789_v1, 0  ;;  %vm2790_vm7 = vcmp.lt.s32.totalorder %v2789_v1, 2 }
 0x222   :  { %v2554_v28 = vclz %v2832_v59  ;;  %v2445_v47 = vshll.u32 %v2444_v53, 30  ;;  %v2468_v13 = vsub.s32 4, %v2444_v53  ;;  %vm2585_vm2 = vcmp.eq.s32.totalorder %v2580_v25, 2 }
 0x223   :  { %vm2582_vm4 = vcmp.eq.s32.totalorder %v2580_v25, 0  ;;  %vm2581_vm6 = vcmp.lt.s32.totalorder %v2580_v25, 2 }
 0x224   :  { %v2833_v46 = vadd.s32 4294967294, %v2554_v28  ;;  %v2446_v18 = vsub.s32 %v2442_v32, %v2445_v47  ;;  %v2469_v21 = vsel %vm2384_vm15, %v2468_v13, %v2444_v53 }
 0x225   :  { %v2471_v56 = vsel %vm2383_vm0, 0, %v2469_v21 }
 0x226   :  { %vm2834_vm11 = vcmp.lt.s32.totalorder %v2833_v46, 0  ;;  %v2448_v14 = vsub.s32 0, %v2446_v18  ;;  %v2475_v59 = vadd.s32 3, %v2471_v56 }
 0x227   :  { %v2557_v50 = vsel %vm2834_vm11, 0, %v2833_v46  ;;  %v2686_v46 = vand.u32 3, %v2471_v56 }
 0x228   :  { %v2558_v38 = vsub.s32 32, %v2557_v50  ;;  %v2562_v58 = vsub.s32 4294967266, %v2557_v50  ;;  %v2559_v20 = vshll.u32 %v2550_v37, %v2557_v50  ;;  %v2828_v45 = vmin.u32 %v2448_v14, %v2446_v18 }
 0x229   :  { %v2476_v53 = vand.u32 3, %v2475_v59  ;;  %vm2691_vm10 = vcmp.eq.s32.totalorder %v2686_v46, 2 }
 0x22a   :  { %v2560_v43 = vshrl.u32 %v2542_v24, %v2558_v38  ;;  %v2563_v27 = vadd.s32 127, %v2562_v58  ;;  %v2450_v3 = vclz %v2828_v45 }
 0x22b   :  { %vm2481_vm9 = vcmp.eq.s32.totalorder %v2476_v53, 2  ;;  %vm2478_vm11 = vcmp.eq.s32.totalorder %v2476_v53, 0 }
 0x22c   :  { %v2561_v60 = vor.u32 %v2560_v43, %v2559_v20  ;;  %v2564_v40 = vshll.u32 %v2563_v27, 23  ;;  %v2829_v22 = vadd.s32 4294967294, %v2450_v3 }
 0x22e   :  { %v2565_v34 = vor.u32 4788187, %v2564_v40  ;;  %v2568_v5 = vcvt.s32.f32 %v2561_v60  ;;  %vm2830_vm12 = vcmp.lt.s32.totalorder %v2829_v22, 0 }
 0x22f   :  { %v2453_v44 = vsel %vm2830_vm12, 0, %v2829_v22  ;;  %vm2688_vm12 = vcmp.eq.s32.totalorder %v2686_v46, 0 }
 0x230   :  { %v2566_v4 = vand.u32 2147483647, %v2565_v34  ;;  %v2454_v33 = vsub.s32 32, %v2453_v44  ;;  %v2458_v8 = vsub.s32 4294967266, %v2453_v44  ;;  %v2455_v17 = vshll.u32 %v2446_v18, %v2453_v44 }
 0x232   :  { %v2569_v39 = vmul.f32 %v2568_v5, %v2566_v4  ;;  %v2456_v41 = vshrl.u32 %v2438_v55, %v2454_v33  ;;  %v2459_v63 = vadd.s32 127, %v2458_v8 }
 0x234   :  { %v2570_v30 = vxor.u32 2147483648, %v2569_v39  ;;  %v2457_v19 = vor.u32 %v2456_v41, %v2455_v17  ;;  %v2460_v52 = vshll.u32 %v2459_v63, 23 }
 0x236   :  { %v2571_v54 = vsel %vm2488_vm13, %v2570_v30, %v2569_v39  ;;  %v2461_v0 = vor.u32 4788187, %v2460_v52  ;;  %v2464_v11 = vcvt.s32.f32 %v2457_v19  ;;  %vm2477_vm13 = vcmp.lt.s32.totalorder %v2476_v53, 2 }
 0x237   :  { %v2574_v6 = vsel %vm2487_vm14, %v4100_v57, %v2571_v54  ;;  %vm2687_vm14 = vcmp.lt.s32.totalorder %v2686_v46, 2 }
 0x238   :  { %2881 = vcosq.f32 %v2574_v6  ;;  %v2462_v15 = vand.u32 2147483647, %v2461_v0 }
 0x239   :  { %2883 = vsinq.f32 %v2574_v6 }
 0x23a   :  { %v2465_v7 = vmul.f32 %v2464_v11, %v2462_v15 }
 0x23c   :  { %v2466_v29 = vxor.u32 2147483648, %v2465_v7 }
 0x23e   :  { %v2467_v61 = vsel %vm2384_vm15, %v2466_v29, %v2465_v7  ;;  %vm2474_vm15 = vweird.f32 %v4108_v23 }
 0x23f   :  { %v2470_v36 = vsel %vm2383_vm0, %v4108_v23, %v2467_v61  ;;  %vm2807_vm0 = vcmask 1048064  }
 0x240   :  { %2885 = vcosq.f32 %v2470_v36 }
 0x241   :  { %2887 = vsinq.f32 %v2470_v36 }
 0x245   :  { %v2882_v49 = vpop.eup %2881 }
 0x246   :  { %v2884_v48 = vpop.eup %2883  ;;  %v2586_v31 = vxor.u32 2147483648, %v2882_v49 }
 0x247   :  { %v2583_v2 = vxor.u32 2147483648, %v2884_v48 }
 0x248   :  { %v2796_v37 = vsel %vm2794_vm3, %v2586_v31, %v2884_v48  ;;  %v2587_v42 = vsel %vm2585_vm2, %v2586_v31, %v2884_v48 }
 0x249   :  { %v2793_v10 = vsel %vm2791_vm5, %v2882_v49, %v2583_v2  ;;  %v2584_v26 = vsel %vm2582_vm4, %v2882_v49, %v2583_v2 }
 0x24a   :  { %v2797_v16 = vsel %vm2790_vm7, %v2793_v10, %v2796_v37  ;;  %v2588_v32 = vsel %vm2581_vm6, %v2584_v26, %v2587_v42 }
 0x24b   :  { %v2798_v51 = vsel %vm2578_vm8, nan, %v2797_v16  ;;  %v2589_v28 = vsel %vm2578_vm8, nan, %v2588_v32 }
 0x24c   :  { %2803 = vrot.lane.b32.xlu1 %v2798_v51, %s2959_s11  ;;  %2592 = vst.msk [vmem:[#allocation5 + $0x8] sm:$0xff] %vm2590_vm1, %v2589_v28 }
 0x24d   :  { %v2886_v47 = vpop.eup %2885 }
 0x24e   :  { %v2888_v50 = vpop.eup %2887  ;;  %v2482_v18 = vxor.u32 2147483648, %v2886_v47 }
 0x24f   :  { %v2479_v24 = vxor.u32 2147483648, %v2888_v50 }
 0x250   :  { %v2693_v57 = vsel %vm2691_vm10, %v2482_v18, %v2888_v50  ;;  %v2483_v38 = vsel %vm2481_vm9, %v2482_v18, %v2888_v50 }
 0x251   :  { %v2690_v58 = vsel %vm2688_vm12, %v2886_v47, %v2479_v24  ;;  %v2480_v14 = vsel %vm2478_vm11, %v2886_v47, %v2479_v24 }
 0x252   :  { %v2694_v20 = vsel %vm2687_vm14, %v2690_v58, %v2693_v57  ;;  %v2484_v43 = vsel %vm2477_vm13, %v2480_v14, %v2483_v38 }
 0x253   :  { %v2695_v27 = vsel %vm2474_vm15, nan, %v2694_v20  ;;  %v2485_v45 = vsel %vm2474_vm15, nan, %v2484_v43 }
 0x254   :  { %2801 = vrot.lane.b32.xlu0 %v2695_v27, %s2959_s11  ;;  %2591 = vst.msk [vmem:[#allocation5] sm:$0xff] %vm2590_vm1, %v2485_v45 }
 0x2be   :  { %v2804_v60 = vpop.permute.xlu1 %2803 }
 0x2bf   :  { %2809 = vst.msk [vmem:[#allocation5 + $0x8] sm:$0xff] %vm2807_vm0, %v2804_v60 }
 0x2c6   :  { %v2802_v40 = vpop.permute.xlu0 %2801 }
 0x2c7   :  { %2808 = vst.msk [vmem:[#allocation5] sm:$0xff] %vm2807_vm0, %v2802_v40 }
 0x2c8   :  { %2920 = shalt.err (!%p2917_p9)
}
 0x2c9   :  { %2821 = dma.vmem_to_hbm [thread:$0]  %s2816_s13, 256, %s4196_s3, [#allocation4], %s2934_s15, %s2934_s15, %s2935_s16  }
 0x2ca   :  { %2931 = dma.done.wait [#allocation4], 256  }
 0x2cb   :  { %2932 = vsyncadd [#allocation4], 4294967040 }
 0x2cc   :  { %2825 = vsyncpa [#allocation3], 1 }
 0x2cd   :  { %2826 = vsyncpa [#allocation4], 1 }

</bundles_post_ra>
